<compile_context>
chip_gen: v5e
topology: v5e:2x2
jax: 0.10.0
libtpu: 0.0.40
codegen_flags: <defaults>
</compile_context>

<pallas_src>
import functools

import jax
import jax.numpy as jnp
import numpy as np
from jax.experimental import pallas as pl
from jax.experimental.pallas import tpu as pltpu

EPS = 1e-5
L_IN = 50          # 50 -> conv1: 48 -> conv2: 24 -> pool: 12 -> conv3: 6 -> pool: 3
C_IN = 8
N_CLASSES = 3
OUT_PAD = 128      # lane-dense output width (sliced back to N_CLASSES in wrapper)
BLOCK_B = 256      # samples per grid step (multiple of 8). ~20 MiB VMEM in bf16:
                   # fits v5e/v6e (128 MiB) and v7x (64 MiB) with the limit below.


# ----------------------------- Pallas kernel ------------------------------- #
def fused_model_kernel(xi_ref, w1, w2, w3, wl1, wl2, vec, b3, bl1, bl2, out_ref):
    """One grid step processes B samples.

    Row layout of xi (24*B rows x 48 feats), built in the wrapper:
        row = p*(6B) + parity*(3B) + l*B + b
      p      in [0,4): which (even,odd) pair of conv1 time steps inside this
                       row's group of 8 consecutive conv1 outputs,
      parity in {0,1}, l in [0,3): conv3 output time w = 2l + parity,
      b      in [0,B): sample index within the block.
    Each row's 48 features are the two conv1 im2col windows of the pair
    (feature = s*24 + k*8 + c).  With the block-diagonal conv1 weight every
    conv becomes a full-K matmul and every pool an elementwise max of
    statically contiguous row slabs -- no strided gathers anywhere.
    """
    f32 = jnp.float32
    bf16 = jnp.bfloat16
    B = out_ref.shape[0]
    R = 6 * B

    v = vec[...]                                                     # (8,128) f32

    # Conv1d(8->64, k=3, s=1) with BatchNorm1d(8) folded in; both members of
    # the time pair computed at once by the block-diagonal (48,128) weight.
    # Then ReLU + BatchNorm1d(64).  Dropout(0.4): identity in eval mode.
    h = jnp.dot(xi_ref[...], w1[...], preferred_element_type=f32)    # (24B,128)
    h = jnp.maximum(h + v[0:1, :], 0.0) * v[1:2, :] + v[2:3, :]

    # Conv1d(64->128, k=2, s=2): the k=0/k=1 taps are the two lane halves, so
    # the stacked (128,128) weight gives conv2 as one full-K dot.
    # Then ReLU + BatchNorm1d(128).
    s2 = jnp.dot(h.astype(bf16), w2[...], preferred_element_type=f32)  # (24B,128)
    s2 = jnp.maximum(s2 + v[3:4, :], 0.0) * v[4:5, :] + v[5:6, :]

    # MaxPool1d(2): pair index p is row-major -> max of contiguous quarters.
    p0 = jnp.maximum(s2[0 * R:1 * R], s2[1 * R:2 * R])   # pooled time 2w   (6B,128)
    p1 = jnp.maximum(s2[2 * R:3 * R], s2[3 * R:4 * R])   # pooled time 2w+1 (6B,128)

    # Conv1d(128->256, k=2, s=2) + ReLU: two full-K dots (one per tap).
    s3 = (jnp.dot(p0.astype(bf16), w3[0], preferred_element_type=f32)
          + jnp.dot(p1.astype(bf16), w3[1], preferred_element_type=f32)
          + b3[...])
    s3 = jnp.maximum(s3, 0.0)                                        # (6B,256)

    # MaxPool1d(2) (+ Dropout identity): parity is row-major -> max of halves.
    s4 = jnp.maximum(s3[0:3 * B], s3[3 * B:6 * B]).astype(bf16)      # (3B,256)

    # classifier: BatchNorm1d(768) folded into wl1/bl1.  Linear(768->512)+ReLU
    # as three contiguous (B,256)x(256,512) dots, one per flatten block l.
    z = bl1[...]
    for l in range(3):
        z = z + jnp.dot(s4[l * B:(l + 1) * B], wl1[l],
                        preferred_element_type=f32)
    z = jnp.maximum(z, 0.0).astype(bf16)                             # (B,512)

    # Linear(512 -> n_classes), zero-padded to 128 lanes for an unmasked store.
    out_ref[...] = jnp.dot(z, wl2[...], preferred_element_type=f32) + bl2[...]


# ------------------------------ wrapper ------------------------------------ #
PARAM_ORDER = ('w1', 'w2', 'w3', 'wl1', 'wl2', 'vec', 'b3', 'bl1', 'bl2')


def _vmem_limit_bytes():
    # ~3/4 of physical VMEM; fallback assumes the smallest generation (v7x, 64 MiB).
    try:
        cap = int(getattr(pltpu.get_tpu_info(), "vmem_capacity_bytes", 0))
    except Exception:
        cap = 0
    if cap <= 0:
        cap = 64 << 20
    return max(32 << 20, min(cap * 3 // 4, 96 << 20))


def _choose_block(n, block_b):
    blk = max(8, ((int(block_b) + 7) // 8) * 8)        # enforce multiple of 8
    if n <= blk:
        # Small batches: split into two grid steps when possible so the
        # "parallel" grid axis can shard across v7x's two TensorCores.
        B = 8 if n <= 8 else (((n + 1) // 2 + 7) // 8) * 8
    else:
        B = blk
    n_pad = ((n + B - 1) // B) * B                     # padded rows are zeros;
    return B, n_pad                                    # all ops are affine/max.


@functools.partial(jax.jit, static_argnames=("block_b",))
def _forward(x_ncl, kp, block_b):
    n = x_ncl.shape[0]
    B, n_pad = _choose_block(n, block_b)
    nb = n_pad // B

    # Layout plumbing (wrapper-side XLA): NCL -> NLC, conv1 im2col, and the
    # (pair, parity, l, sample)-major row ordering the kernel expects.
    x_lc = jnp.transpose(x_ncl, (0, 2, 1)).astype(jnp.float32)          # (n,50,8)
    win = jnp.concatenate([x_lc[:, 0:48, :], x_lc[:, 1:49, :], x_lc[:, 2:50, :]],
                          axis=-1)                                      # (n,48,24), f = k*8+c
    # conv1 time t = 16*l + 8*parity + 2*p + s
    win = win.reshape(n, 3, 2, 4, 2, 24).reshape(n, 3, 2, 4, 48)        # (n,l,par,p,48)
    win = jnp.transpose(win, (3, 2, 1, 0, 4))                           # (p,par,l,n,48)
    if n_pad != n:
        win = jnp.pad(win, ((0, 0), (0, 0), (0, 0), (0, n_pad - n), (0, 0)))
    xi = win.reshape(4, 2, 3, nb, B, 48)
    xi = jnp.transpose(xi, (3, 0, 1, 2, 4, 5)).reshape(n_pad * 24, 48)
    xi = xi.astype(jnp.bfloat16)                                        # bf16 input DMA

    params = [kp[k] for k in PARAM_ORDER]

    def const_spec(shape):
        nd = len(shape)
        return pl.BlockSpec(shape, lambda i, nd=nd: (0,) * nd)

    in_specs = [pl.BlockSpec((24 * B, 48), lambda i: (i, 0))]
    in_specs += [const_spec(p.shape) for p in params]

    out = pl.pallas_call(
        fused_model_kernel,
        out_shape=jax.ShapeDtypeStruct((n_pad, OUT_PAD), jnp.float32),
        grid_spec=pltpu.PrefetchScalarGridSpec(
            num_scalar_prefetch=0,
            grid=(nb,),
            in_specs=in_specs,
            out_specs=pl.BlockSpec((B, OUT_PAD), lambda i: (i, 0)),
        ),
        compiler_params=pltpu.CompilerParams(
            dimension_semantics=("parallel",),
            vmem_limit_bytes=_vmem_limit_bytes()),
    )(xi, *params)
    return out[:n, :N_CLASSES]


def run_model(x_ncl, kp, block_b=BLOCK_B):
    return _forward(x_ncl, kp, block_b)


# --------------------- deterministic parameter setup ----------------------- #
def init_params(key):
    ks = jax.random.split(key, 26)
    nrm = lambda k, s, sc: (sc * jax.random.normal(k, s)).astype(jnp.float32)
    uni = lambda k, s: jax.random.uniform(k, s, jnp.float32, 0.5, 1.5)
    p = {}
    # BatchNorm params as (gamma, beta, running_mean, running_var)
    p['bn0'] = (uni(ks[0], (8,)), nrm(ks[1], (8,), 0.1), nrm(ks[2], (8,), 0.1), uni(ks[3], (8,)))
    p['conv1'] = (nrm(ks[4], (64, 8, 3), 0.2), nrm(ks[5], (64,), 0.1))
    p['bn1'] = (uni(ks[6], (64,)), nrm(ks[7], (64,), 0.1), nrm(ks[8], (64,), 0.1), uni(ks[9], (64,)))
    p['conv2'] = (nrm(ks[10], (128, 64, 2), 0.09), nrm(ks[11], (128,), 0.1))
    p['bn2'] = (uni(ks[12], (128,)), nrm(ks[13], (128,), 0.1), nrm(ks[14], (128,), 0.1), uni(ks[15], (128,)))
    p['conv3'] = (nrm(ks[16], (256, 128, 2), 0.06), nrm(ks[17], (256,), 0.1))
    p['bnc'] = (uni(ks[18], (768,)), nrm(ks[19], (768,), 0.1), nrm(ks[20], (768,), 0.1), uni(ks[21], (768,)))
    p['lin1'] = (nrm(ks[22], (512, 768), 0.04), nrm(ks[23], (512,), 0.1))
    p['lin2'] = (nrm(ks[24], (N_CLASSES, 512), 0.04), nrm(ks[25], (N_CLASSES,), 0.1))
    return p


def fold_bn(g, b, m, v):
    a = g / jnp.sqrt(v + EPS)
    return a, b - m * a


def to_kernel_params(p):
    """Fold BatchNorms, repack conv weights for the lane-packed layout and
    cast every matmul operand to bf16 (biases / BN affines stay f32)."""
    bf16 = jnp.bfloat16
    kp = {}

    # conv1 with BatchNorm1d(8) folded in; block-diagonal over the (even,odd)
    # time pair: rows 0:24 -> lanes 0:64, rows 24:48 -> lanes 64:128.
    a0, c0 = fold_bn(*p['bn0'])                                  # (8,)
    w1, b1 = p['conv1']                                          # (64,8,3), (64,)
    w1s = jnp.transpose(w1, (2, 1, 0)).reshape(24, 64)           # row = k*8 + c
    w1f = w1s * jnp.tile(a0, 3)[:, None]
    b1f = b1 + jnp.tile(c0, 3) @ w1s                             # (64,)
    w1bd = jnp.zeros((48, 128), jnp.float32)
    w1bd = w1bd.at[0:24, 0:64].set(w1f).at[24:48, 64:128].set(w1f)
    kp['w1'] = w1bd.astype(bf16)

    a1, c1 = fold_bn(*p['bn1'])                                  # (64,)
    w2, b2 = p['conv2']                                          # (128,64,2), (128,)
    kp['w2'] = jnp.transpose(w2, (2, 1, 0)).reshape(128, 128).astype(bf16)  # row = k*64 + cin
    a2, c2 = fold_bn(*p['bn2'])                                  # (128,)

    # Per-channel bias / BN affine vectors packed into one (8,128) f32 array:
    # rows: [b1, a1, c1] tiled over both lane halves, then [b2, a2, c2], pad.
    zero = jnp.zeros((128,), jnp.float32)
    kp['vec'] = jnp.stack([jnp.tile(b1f, 2), jnp.tile(a1, 2), jnp.tile(c1, 2),
                           b2, a2, c2, zero, zero], axis=0)

    w3, b3 = p['conv3']                                          # (256,128,2), (256,)
    kp['w3'] = jnp.transpose(w3, (2, 1, 0)).astype(bf16)         # (2,128,256)
    kp['b3'] = b3.reshape(1, 256)

    # classifier: fold BatchNorm1d(768) into Linear(768->512); PyTorch flatten
    # feature index is c*3 + l, so wl1 is regrouped per flatten block l.
    ac, cc = fold_bn(*p['bnc'])                                  # (768,)
    wl1, bl1 = p['lin1']                                         # (512,768), (512,)
    wl1s = wl1 * ac[None, :]
    kp['wl1'] = jnp.transpose(wl1s.reshape(512, 256, 3), (2, 1, 0)).astype(bf16)  # (3,256,512)
    kp['bl1'] = (bl1 + wl1 @ cc).reshape(1, 512)

    wl2, bl2 = p['lin2']                                         # (3,512), (3,)
    kp['wl2'] = (jnp.zeros((512, OUT_PAD), jnp.float32)
                 .at[:, :N_CLASSES].set(wl2.T)).astype(bf16)
    kp['bl2'] = jnp.zeros((1, OUT_PAD), jnp.float32).at[0, :N_CLASSES].set(bl2)
    return kp


# --------------------------- pure-JAX reference ---------------------------- #
def reference(x, p):
    def bn(h, g, b, m, v):
        return (h - m[None, :, None]) * (g / jnp.sqrt(v + EPS))[None, :, None] + b[None, :, None]

    def conv(h, w, b, s):
        y = jax.lax.conv_general_dilated(h, w, window_strides=(s,), padding='VALID',
                                         dimension_numbers=('NCH', 'OIH', 'NCH'))
        return y + b[None, :, None]

    def mp2(h):
        n, c, l = h.shape
        return h.reshape(n, c, l // 2, 2).max(axis=-1)

    h = bn(x, *p['bn0'])
    h = jax.nn.relu(conv(h, *p['conv1'], 1))
    h = bn(h, *p['bn1'])
    h = jax.nn.relu(conv(h, *p['conv2'], 2))
    h = bn(h, *p['bn2'])
    h = mp2(h)
    h = jax.nn.relu(conv(h, *p['conv3'], 2))
    h = mp2(h)
    f = h.reshape(h.shape[0], -1)                                # (N,768), (c,l) order
    g, b, m, v = p['bnc']
    f = (f - m[None]) * (g / jnp.sqrt(v + EPS))[None] + b[None]
    f = jax.nn.relu(f @ p['lin1'][0].T + p['lin1'][1][None])
    return f @ p['lin2'][0].T + p['lin2'][1][None]


if __name__ == "__main__":
    key = jax.random.PRNGKey(0)
    kx, kparams = jax.random.split(key)
    p = init_params(kparams)
    kp = to_kernel_params(p)

    # bf16 matmul operands (f32 accumulation) -> compare against the f32
    # reference with a bf16-appropriate tolerance.
    TOL = dict(rtol=5e-2, atol=8e-2)

    # Small batch, single grid step (n=4 -> B=8, grid=1).
    x = jax.random.normal(kx, (4, C_IN, L_IN), jnp.float32)      # NCL, like PyTorch
    out = jax.block_until_ready(run_model(x, kp))
    np.testing.assert_allclose(np.asarray(out), np.asarray(reference(x, p)), **TOL)

    # Small-batch split path: n=20 -> B=16, padded to 32, grid=2 ("parallel").
    x2 = jax.random.normal(jax.random.PRNGKey(1), (20, C_IN, L_IN), jnp.float32)
    ref2 = np.asarray(reference(x2, p))
    out2 = jax.block_until_ready(run_model(x2, kp))
    np.testing.assert_allclose(np.asarray(out2), ref2, **TOL)

    # Explicit small block: n=20, B=8 -> padded to 24, grid=3.
    out3 = jax.block_until_ready(run_model(x2, kp, block_b=8))
    np.testing.assert_allclose(np.asarray(out3), ref2, **TOL)

    print("KERNEL_OK")
</pallas_src>

<mosaic_0001>
module attributes {stable_mosaic.version = 11 : i64} {
  func.func @fused_model_kernel(%arg0: i32, %arg1: memref<192x48xbf16, #tpu.memory_space<vmem>>, %arg2: memref<48x128xbf16, #tpu.memory_space<vmem>>, %arg3: memref<128x128xbf16, #tpu.memory_space<vmem>>, %arg4: memref<2x128x256xbf16, #tpu.memory_space<vmem>>, %arg5: memref<3x256x512xbf16, #tpu.memory_space<vmem>>, %arg6: memref<512x128xbf16, #tpu.memory_space<vmem>>, %arg7: memref<8x128xf32, #tpu.memory_space<vmem>>, %arg8: memref<1x256xf32, #tpu.memory_space<vmem>>, %arg9: memref<1x512xf32, #tpu.memory_space<vmem>>, %arg10: memref<1x128xf32, #tpu.memory_space<vmem>>, %arg11: memref<8x128xf32, #tpu.memory_space<vmem>>) attributes {dimension_semantics = [#tpu.dimension_semantics<parallel>], iteration_bounds = array<i64: 1>, scalar_prefetch = 0 : i64, scratch_operands = 0 : i64, tpu.core_type = #tpu.core_type<tc>, window_params = [{transform_indices = @transform_0, window_bounds = array<i64: 192, 48>}, {pipeline_mode = #tpu.pipeline_mode<synchronous>, transform_indices = @transform_1, window_bounds = array<i64: 48, 128>}, {pipeline_mode = #tpu.pipeline_mode<synchronous>, transform_indices = @transform_2, window_bounds = array<i64: 128, 128>}, {pipeline_mode = #tpu.pipeline_mode<synchronous>, transform_indices = @transform_3, window_bounds = array<i64: 2, 128, 256>}, {pipeline_mode = #tpu.pipeline_mode<synchronous>, transform_indices = @transform_4, window_bounds = array<i64: 3, 256, 512>}, {pipeline_mode = #tpu.pipeline_mode<synchronous>, transform_indices = @transform_5, window_bounds = array<i64: 512, 128>}, {pipeline_mode = #tpu.pipeline_mode<synchronous>, transform_indices = @transform_6, window_bounds = array<i64: 8, 128>}, {pipeline_mode = #tpu.pipeline_mode<synchronous>, transform_indices = @transform_7, window_bounds = array<i64: 1, 256>}, {pipeline_mode = #tpu.pipeline_mode<synchronous>, transform_indices = @transform_8, window_bounds = array<i64: 1, 512>}, {pipeline_mode = #tpu.pipeline_mode<synchronous>, transform_indices = @transform_9, window_bounds = array<i64: 1, 128>}, {transform_indices = @transform_10, window_bounds = array<i64: 8, 128>}]} {
    %c0 = arith.constant 0 : index
    %c0_0 = arith.constant 0 : index
    %0 = vector.load %arg7[%c0, %c0_0] : memref<8x128xf32, #tpu.memory_space<vmem>>, vector<8x128xf32>
    %c0_1 = arith.constant 0 : index
    %c0_2 = arith.constant 0 : index
    %1 = vector.load %arg1[%c0_1, %c0_2] : memref<192x48xbf16, #tpu.memory_space<vmem>>, vector<192x48xbf16>
    %c0_3 = arith.constant 0 : index
    %c0_4 = arith.constant 0 : index
    %2 = vector.load %arg2[%c0_3, %c0_4] : memref<48x128xbf16, #tpu.memory_space<vmem>>, vector<48x128xbf16>
    %cst = arith.constant dense<0.000000e+00> : vector<192x128xf32>
    %3 = tpu.matmul %1, %2, %cst {dimension_numbers = #tpu.dot_dimension_numbers<[1], [0], [0], [1], [0, 0, 1, 1], [], []>} : vector<192x48xbf16>, vector<48x128xbf16>, vector<192x128xf32> -> vector<192x128xf32>
    %4 = vector.extract_strided_slice %0 {offsets = [0, 0], sizes = [1, 128], strides = [1, 1]} : vector<8x128xf32> to vector<1x128xf32>
    %5 = vector.broadcast %4 : vector<1x128xf32> to vector<192x128xf32>
    %6 = arith.addf %3, %5 : vector<192x128xf32>
    %cst_5 = arith.constant 0.000000e+00 : f32
    %7 = vector.broadcast %cst_5 : f32 to vector<192x128xf32>
    %8 = arith.maximumf %6, %7 : vector<192x128xf32>
    %9 = vector.extract_strided_slice %0 {offsets = [1, 0], sizes = [1, 128], strides = [1, 1]} : vector<8x128xf32> to vector<1x128xf32>
    %10 = vector.broadcast %9 : vector<1x128xf32> to vector<192x128xf32>
    %11 = arith.mulf %8, %10 : vector<192x128xf32>
    %12 = vector.extract_strided_slice %0 {offsets = [2, 0], sizes = [1, 128], strides = [1, 1]} : vector<8x128xf32> to vector<1x128xf32>
    %13 = vector.broadcast %12 : vector<1x128xf32> to vector<192x128xf32>
    %14 = arith.addf %11, %13 : vector<192x128xf32>
    %15 = arith.truncf %14 : vector<192x128xf32> to vector<192x128xbf16>
    %c0_6 = arith.constant 0 : index
    %c0_7 = arith.constant 0 : index
    %16 = vector.load %arg3[%c0_6, %c0_7] : memref<128x128xbf16, #tpu.memory_space<vmem>>, vector<128x128xbf16>
    %cst_8 = arith.constant dense<0.000000e+00> : vector<192x128xf32>
    %17 = tpu.matmul %15, %16, %cst_8 {dimension_numbers = #tpu.dot_dimension_numbers<[1], [0], [0], [1], [0, 0, 1, 1], [], []>} : vector<192x128xbf16>, vector<128x128xbf16>, vector<192x128xf32> -> vector<192x128xf32>
    %18 = vector.extract_strided_slice %0 {offsets = [3, 0], sizes = [1, 128], strides = [1, 1]} : vector<8x128xf32> to vector<1x128xf32>
    %19 = vector.broadcast %18 : vector<1x128xf32> to vector<192x128xf32>
    %20 = arith.addf %17, %19 : vector<192x128xf32>
    %cst_9 = arith.constant 0.000000e+00 : f32
    %21 = vector.broadcast %cst_9 : f32 to vector<192x128xf32>
    %22 = arith.maximumf %20, %21 : vector<192x128xf32>
    %23 = vector.extract_strided_slice %0 {offsets = [4, 0], sizes = [1, 128], strides = [1, 1]} : vector<8x128xf32> to vector<1x128xf32>
    %24 = vector.broadcast %23 : vector<1x128xf32> to vector<192x128xf32>
    %25 = arith.mulf %22, %24 : vector<192x128xf32>
    %26 = vector.extract_strided_slice %0 {offsets = [5, 0], sizes = [1, 128], strides = [1, 1]} : vector<8x128xf32> to vector<1x128xf32>
    %27 = vector.broadcast %26 : vector<1x128xf32> to vector<192x128xf32>
    %28 = arith.addf %25, %27 : vector<192x128xf32>
    %29 = vector.extract_strided_slice %28 {offsets = [0, 0], sizes = [48, 128], strides = [1, 1]} : vector<192x128xf32> to vector<48x128xf32>
    %30 = vector.extract_strided_slice %28 {offsets = [48, 0], sizes = [48, 128], strides = [1, 1]} : vector<192x128xf32> to vector<48x128xf32>
    %31 = arith.maximumf %29, %30 : vector<48x128xf32>
    %32 = vector.extract_strided_slice %28 {offsets = [96, 0], sizes = [48, 128], strides = [1, 1]} : vector<192x128xf32> to vector<48x128xf32>
    %33 = vector.extract_strided_slice %28 {offsets = [144, 0], sizes = [48, 128], strides = [1, 1]} : vector<192x128xf32> to vector<48x128xf32>
    %34 = arith.maximumf %32, %33 : vector<48x128xf32>
    %35 = arith.truncf %31 : vector<48x128xf32> to vector<48x128xbf16>
    %c0_10 = arith.constant 0 : index
    %c0_11 = arith.constant 0 : index
    %c0_12 = arith.constant 0 : index
    %36 = vector.load %arg4[%c0_10, %c0_11, %c0_12] : memref<2x128x256xbf16, #tpu.memory_space<vmem>>, vector<1x128x256xbf16>
    %37 = vector.shape_cast %36 : vector<1x128x256xbf16> to vector<128x256xbf16>
    %cst_13 = arith.constant dense<0.000000e+00> : vector<48x256xf32>
    %38 = tpu.matmul %35, %37, %cst_13 {dimension_numbers = #tpu.dot_dimension_numbers<[1], [0], [0], [1], [0, 0, 1, 1], [], []>} : vector<48x128xbf16>, vector<128x256xbf16>, vector<48x256xf32> -> vector<48x256xf32>
    %39 = arith.truncf %34 : vector<48x128xf32> to vector<48x128xbf16>
    %c1 = arith.constant 1 : index
    %c0_14 = arith.constant 0 : index
    %c0_15 = arith.constant 0 : index
    %40 = vector.load %arg4[%c1, %c0_14, %c0_15] : memref<2x128x256xbf16, #tpu.memory_space<vmem>>, vector<1x128x256xbf16>
    %41 = vector.shape_cast %40 : vector<1x128x256xbf16> to vector<128x256xbf16>
    %cst_16 = arith.constant dense<0.000000e+00> : vector<48x256xf32>
    %42 = tpu.matmul %39, %41, %cst_16 {dimension_numbers = #tpu.dot_dimension_numbers<[1], [0], [0], [1], [0, 0, 1, 1], [], []>} : vector<48x128xbf16>, vector<128x256xbf16>, vector<48x256xf32> -> vector<48x256xf32>
    %43 = arith.addf %38, %42 : vector<48x256xf32>
    %c0_17 = arith.constant 0 : index
    %c0_18 = arith.constant 0 : index
    %44 = vector.load %arg8[%c0_17, %c0_18] : memref<1x256xf32, #tpu.memory_space<vmem>>, vector<1x256xf32>
    %45 = vector.broadcast %44 : vector<1x256xf32> to vector<48x256xf32>
    %46 = arith.addf %43, %45 : vector<48x256xf32>
    %cst_19 = arith.constant 0.000000e+00 : f32
    %47 = vector.broadcast %cst_19 : f32 to vector<48x256xf32>
    %48 = arith.maximumf %46, %47 : vector<48x256xf32>
    %49 = vector.extract_strided_slice %48 {offsets = [0, 0], sizes = [24, 256], strides = [1, 1]} : vector<48x256xf32> to vector<24x256xf32>
    %50 = vector.extract_strided_slice %48 {offsets = [24, 0], sizes = [24, 256], strides = [1, 1]} : vector<48x256xf32> to vector<24x256xf32>
    %51 = arith.maximumf %49, %50 : vector<24x256xf32>
    %52 = arith.truncf %51 : vector<24x256xf32> to vector<24x256xbf16>
    %c0_20 = arith.constant 0 : index
    %c0_21 = arith.constant 0 : index
    %53 = vector.load %arg9[%c0_20, %c0_21] : memref<1x512xf32, #tpu.memory_space<vmem>>, vector<1x512xf32>
    %54 = vector.extract_strided_slice %52 {offsets = [0, 0], sizes = [8, 256], strides = [1, 1]} : vector<24x256xbf16> to vector<8x256xbf16>
    %c0_22 = arith.constant 0 : index
    %c0_23 = arith.constant 0 : index
    %c0_24 = arith.constant 0 : index
    %55 = vector.load %arg5[%c0_22, %c0_23, %c0_24] : memref<3x256x512xbf16, #tpu.memory_space<vmem>>, vector<1x256x512xbf16>
    %56 = vector.shape_cast %55 : vector<1x256x512xbf16> to vector<256x512xbf16>
    %cst_25 = arith.constant dense<0.000000e+00> : vector<8x512xf32>
    %57 = tpu.matmul %54, %56, %cst_25 {dimension_numbers = #tpu.dot_dimension_numbers<[1], [0], [0], [1], [0, 0, 1, 1], [], []>} : vector<8x256xbf16>, vector<256x512xbf16>, vector<8x512xf32> -> vector<8x512xf32>
    %58 = vector.broadcast %53 : vector<1x512xf32> to vector<8x512xf32>
    %59 = arith.addf %58, %57 : vector<8x512xf32>
    %60 = vector.extract_strided_slice %52 {offsets = [8, 0], sizes = [8, 256], strides = [1, 1]} : vector<24x256xbf16> to vector<8x256xbf16>
    %c1_26 = arith.constant 1 : index
    %c0_27 = arith.constant 0 : index
    %c0_28 = arith.constant 0 : index
    %61 = vector.load %arg5[%c1_26, %c0_27, %c0_28] : memref<3x256x512xbf16, #tpu.memory_space<vmem>>, vector<1x256x512xbf16>
    %62 = vector.shape_cast %61 : vector<1x256x512xbf16> to vector<256x512xbf16>
    %cst_29 = arith.constant dense<0.000000e+00> : vector<8x512xf32>
    %63 = tpu.matmul %60, %62, %cst_29 {dimension_numbers = #tpu.dot_dimension_numbers<[1], [0], [0], [1], [0, 0, 1, 1], [], []>} : vector<8x256xbf16>, vector<256x512xbf16>, vector<8x512xf32> -> vector<8x512xf32>
    %64 = arith.addf %59, %63 : vector<8x512xf32>
    %65 = vector.extract_strided_slice %52 {offsets = [16, 0], sizes = [8, 256], strides = [1, 1]} : vector<24x256xbf16> to vector<8x256xbf16>
    %c2 = arith.constant 2 : index
    %c0_30 = arith.constant 0 : index
    %c0_31 = arith.constant 0 : index
    %66 = vector.load %arg5[%c2, %c0_30, %c0_31] : memref<3x256x512xbf16, #tpu.memory_space<vmem>>, vector<1x256x512xbf16>
    %67 = vector.shape_cast %66 : vector<1x256x512xbf16> to vector<256x512xbf16>
    %cst_32 = arith.constant dense<0.000000e+00> : vector<8x512xf32>
    %68 = tpu.matmul %65, %67, %cst_32 {dimension_numbers = #tpu.dot_dimension_numbers<[1], [0], [0], [1], [0, 0, 1, 1], [], []>} : vector<8x256xbf16>, vector<256x512xbf16>, vector<8x512xf32> -> vector<8x512xf32>
    %69 = arith.addf %64, %68 : vector<8x512xf32>
    %cst_33 = arith.constant 0.000000e+00 : f32
    %70 = vector.broadcast %cst_33 : f32 to vector<8x512xf32>
    %71 = arith.maximumf %69, %70 : vector<8x512xf32>
    %72 = arith.truncf %71 : vector<8x512xf32> to vector<8x512xbf16>
    %c0_34 = arith.constant 0 : index
    %c0_35 = arith.constant 0 : index
    %73 = vector.load %arg6[%c0_34, %c0_35] : memref<512x128xbf16, #tpu.memory_space<vmem>>, vector<512x128xbf16>
    %cst_36 = arith.constant dense<0.000000e+00> : vector<8x128xf32>
    %74 = tpu.matmul %72, %73, %cst_36 {dimension_numbers = #tpu.dot_dimension_numbers<[1], [0], [0], [1], [0, 0, 1, 1], [], []>} : vector<8x512xbf16>, vector<512x128xbf16>, vector<8x128xf32> -> vector<8x128xf32>
    %c0_37 = arith.constant 0 : index
    %c0_38 = arith.constant 0 : index
    %75 = vector.load %arg10[%c0_37, %c0_38] : memref<1x128xf32, #tpu.memory_space<vmem>>, vector<1x128xf32>
    %76 = vector.broadcast %75 : vector<1x128xf32> to vector<8x128xf32>
    %77 = arith.addf %74, %76 : vector<8x128xf32>
    %c0_39 = arith.constant 0 : index
    %c0_40 = arith.constant 0 : index
    %78 = vector.load %arg11[%c0_39, %c0_40] : memref<8x128xf32, #tpu.memory_space<vmem>>, vector<8x128xf32>
    tpu.vector_store %arg11[%c0_39, %c0_40], %77 {strides = array<i32>} : memref<8x128xf32, #tpu.memory_space<vmem>>, vector<8x128xf32>,
    return
  }
  func.func @transform_0(%arg0: i32) -> (i32, i32) {
    %c0_i32 = arith.constant 0 : i32
    %c0_i32_0 = arith.constant 0 : i32
    return %arg0, %c0_i32 : i32, i32
  }
  func.func @transform_1(%arg0: i32) -> (i32, i32) {
    %c0_i32 = arith.constant 0 : i32
    %c0_i32_0 = arith.constant 0 : i32
    %c0_i32_1 = arith.constant 0 : i32
    return %c0_i32, %c0_i32_0 : i32, i32
  }
  func.func @transform_2(%arg0: i32) -> (i32, i32) {
    %c0_i32 = arith.constant 0 : i32
    %c0_i32_0 = arith.constant 0 : i32
    %c0_i32_1 = arith.constant 0 : i32
    return %c0_i32, %c0_i32_0 : i32, i32
  }
  func.func @transform_3(%arg0: i32) -> (i32, i32, i32) {
    %c0_i32 = arith.constant 0 : i32
    %c0_i32_0 = arith.constant 0 : i32
    %c0_i32_1 = arith.constant 0 : i32
    %c0_i32_2 = arith.constant 0 : i32
    return %c0_i32, %c0_i32_0, %c0_i32_1 : i32, i32, i32
  }
  func.func @transform_4(%arg0: i32) -> (i32, i32, i32) {
    %c0_i32 = arith.constant 0 : i32
    %c0_i32_0 = arith.constant 0 : i32
    %c0_i32_1 = arith.constant 0 : i32
    %c0_i32_2 = arith.constant 0 : i32
    return %c0_i32, %c0_i32_0, %c0_i32_1 : i32, i32, i32
  }
  func.func @transform_5(%arg0: i32) -> (i32, i32) {
    %c0_i32 = arith.constant 0 : i32
    %c0_i32_0 = arith.constant 0 : i32
    %c0_i32_1 = arith.constant 0 : i32
    return %c0_i32, %c0_i32_0 : i32, i32
  }
  func.func @transform_6(%arg0: i32) -> (i32, i32) {
    %c0_i32 = arith.constant 0 : i32
    %c0_i32_0 = arith.constant 0 : i32
    %c0_i32_1 = arith.constant 0 : i32
    return %c0_i32, %c0_i32_0 : i32, i32
  }
  func.func @transform_7(%arg0: i32) -> (i32, i32) {
    %c0_i32 = arith.constant 0 : i32
    %c0_i32_0 = arith.constant 0 : i32
    %c0_i32_1 = arith.constant 0 : i32
    return %c0_i32, %c0_i32_0 : i32, i32
  }
  func.func @transform_8(%arg0: i32) -> (i32, i32) {
    %c0_i32 = arith.constant 0 : i32
    %c0_i32_0 = arith.constant 0 : i32
    %c0_i32_1 = arith.constant 0 : i32
    return %c0_i32, %c0_i32_0 : i32, i32
  }
  func.func @transform_9(%arg0: i32) -> (i32, i32) {
    %c0_i32 = arith.constant 0 : i32
    %c0_i32_0 = arith.constant 0 : i32
    %c0_i32_1 = arith.constant 0 : i32
    return %c0_i32, %c0_i32_0 : i32, i32
  }
  func.func @transform_10(%arg0: i32) -> (i32, i32) {
    %c0_i32 = arith.constant 0 : i32
    %c0_i32_0 = arith.constant 0 : i32
    return %arg0, %c0_i32 : i32, i32
  }
}

</mosaic_0001>

<bundles_post_ra>
// kernel: _forward.1
= control target key start
LH: loop header
LB: loop body
LE: loop exit
PB: predicated region body
PF: predicated region fallthrough
CT: control target
= control target key end

     0   :  { %15 = vsyncpa [#allocation3], 0  ;;  %s4196_s16 = smov [#allocation2]   ;;  %s4197_s18 = smov 256   ;;  %s4984_s0 = inlined_call_operand.vmem [shape: bf16[192,48], index: 0, kind: input, shape index: {}]   ;;  %s4985_s1 = inlined_call_operand.vmem [shape: bf16[48,128], index: 1, kind: input, shape index: {}]   ;;  %s4986_s2 = inlined_call_operand.vmem [shape: bf16[128,128], index: 2, kind: input, shape index: {}]   ;;  %s4987_s3 = inlined_call_operand.vmem [shape: bf16[2,128,256], index: 3, kind: input, shape index: {}]   ;;  %s4988_s4 = inlined_call_operand.hbm [shape: bf16[3,256,512], index: 4, kind: input, shape index: {}]   ;;  %s4989_s5 = inlined_call_operand.vmem [shape: bf16[512,128], index: 5, kind: input, shape index: {}]   ;;  %s4990_s6 = inlined_call_operand.vmem [shape: f32[8,128], index: 6, kind: input, shape index: {}]   ;;  %s4991_s7 = inlined_call_operand.vmem [shape: f32[1,256], index: 7, kind: input, shape index: {}]   ;;  %s4992_s8 = inlined_call_operand.vmem [shape: f32[1,512], index: 8, kind: input, shape index: {}]   ;;  %s4993_s9 = inlined_call_operand.vmem [shape: f32[1,128], index: 9, kind: input, shape index: {}]   ;;  %s4994_s10 = inlined_call_operand.vmem [shape: f32[8,128], index: 10, kind: output, shape index: {}]  }
   0x1   :  { %s28_s15 = sshll.u32 %s4988_s4, 4  ;;  %s30_s17 = sshll.u32 %s4196_s16, 4  ;;  %s29_s15 = int_to_ptr.hbm [resolvable:$true] %s28_s15  ;;  %s31_s17 = int_to_ptr.vmem [resolvable:$true] %s30_s17 }
   0x2   :  { %s4198_s19 = smov 16  }
   0x3   :  { %36 = dma.hbm_to_vmem [thread:$0]  %s29_s15, 24576, %s31_s17, [#allocation3], %s4197_s18, %s4197_s18, %s4198_s19  }
   0x4   :  { %4194 = dma.done.wait [#allocation3], 24576  }
   0x5   :  { %4195 = vsyncadd [#allocation3], 4294942720  ;;  %v3901_v0 = vld [vmem:[%s4985_s1 + $0x10] sm:$0xff]  ;;  %v3900_v1 = vld [vmem:[%s4985_s1 + $0x8] sm:$0xff]  ;;  %vm162_vm0 = vcmask 392192  }
   0x6   :  { %204 = vmatpush.bf16.msra.mxu0 %v3901_v0  ;;  %v3899_v2 = vld [vmem:[%s4985_s1] sm:$0xff]  ;;  %v3888_v4 = vld [vmem:[%s4984_s0 + $0x8] sm:$0xff]  ;;  %v3889_v5 = vld [vmem:[%s4984_s0 + $0x10] sm:$0xff] }
   0x7   :  { %v3887_v3 = vld [vmem:[%s4984_s0] sm:$0xff]  ;;  %v3890_v6 = vld [vmem:[%s4984_s0 + $0x18] sm:$0xff]  ;;  %v3892_v8 = vld [vmem:[%s4984_s0 + $0x28] sm:$0xff] }
   0x8   :  { %v3891_v7 = vld [vmem:[%s4984_s0 + $0x20] sm:$0xff]  ;;  %v3909_v9 = vld [vmem:[%s4986_s2 + $0x38] sm:$0xff]  ;;  %v3908_v10 = vld [vmem:[%s4986_s2 + $0x30] sm:$0xff] }
   0x9   :  { %419 = vmatpush.bf16.msra.mxu1 %v3909_v9  ;;  %v3907_v11 = vld [vmem:[%s4986_s2 + $0x28] sm:$0xff]  ;;  %v3906_v12 = vld [vmem:[%s4986_s2 + $0x20] sm:$0xff]  ;;  %v3893_v13 = vld [vmem:[%s4984_s0 + $0x30] sm:$0xff] }
   0xa   :  { %205 = vmatpush.bf16.msra.mxu0 %v3900_v1  ;;  %v3905_v14 = vld [vmem:[%s4986_s2 + $0x18] sm:$0xff]  ;;  %v3904_v15 = vld [vmem:[%s4986_s2 + $0x10] sm:$0xff]  ;;  %v3903_v16 = vld [vmem:[%s4986_s2 + $0x8] sm:$0xff] }
   0xb   :  { %v3902_v17 = vld [vmem:[%s4986_s2] sm:$0xff]  ;;  %v3894_v18 = vld [vmem:[%s4984_s0 + $0x38] sm:$0xff]  ;;  %v3896_v32 = vld [vmem:[%s4984_s0 + $0x48] sm:$0xff] }
   0xc   :  { %v4325_v19 = vld [vmem:[%s4990_s6] sm:$0xff]  ;;  %v3897_v44 = vld [vmem:[%s4984_s0 + $0x50] sm:$0xff]  ;;  %v3898_v56 = vld [vmem:[%s4984_s0 + $0x58] sm:$0xff] }
   0xd   :  { %420 = vmatpush.bf16.msra.mxu1 %v3908_v10  ;;  %v4328_v20 = vperm.slane %v4325_v19, 0  ;;  %v3895_v21 = vld [vmem:[%s4984_s0 + $0x40] sm:$0xff]  ;;  %v4336_v25 = vperm.slane %v4325_v19, 1  ;;  %v4341_v30 = vperm.slane %v4325_v19, 2 }
   0xe   :  { %206 = vmatpush.bf16.msra.mxu0 %v3899_v2 }
  0x11   :  { %2803 = vmatmul.msk.bf16.vlgmr.msra.gmra.mxu0 %vm162_vm0, %v3887_v3  ;;  %421 = vmatpush.bf16.msra.mxu1 %v3907_v11 }
  0x15   :  { %422 = vmatpush.bf16.msra.mxu1 %v3906_v12 }
  0x19   :  { %423 = vmatpush.bf16.msra.mxu1 %v3905_v14 }
  0x1d   :  { %424 = vmatpush.bf16.msra.mxu1 %v3904_v15 }
  0x21   :  { %2804 = vmatmul.msk.bf16.gmra.mxu0 %vm162_vm0, %v3888_v4  ;;  %425 = vmatpush.bf16.msra.mxu1 %v3903_v16 }
  0x25   :  { %426 = vmatpush.bf16.msra.mxu1 %v3902_v17 }
  0x31   :  { %2805 = vmatmul.msk.bf16.gmra.mxu0 %vm162_vm0, %v3889_v5 }
  0x41   :  { %2806 = vmatmul.msk.bf16.gmra.mxu0 %vm162_vm0, %v3890_v6 }
  0x51   :  { %2807 = vmatmul.msk.bf16.gmra.mxu0 %vm162_vm0, %v3891_v7 }
  0x61   :  { %2808 = vmatmul.msk.bf16.gmra.mxu0 %vm162_vm0, %v3892_v8 }
  0x71   :  { %2809 = vmatmul.msk.bf16.gmra.mxu0 %vm162_vm0, %v3893_v13 }
  0x81   :  { %2810 = vmatmul.msk.bf16.gmra.mxu0 %vm162_vm0, %v3894_v18 }
  0x8e   :  { %v208_v22 = vpop.f32.mrf.mxu0 }
  0x8f   :  { %v209_v23 = vadd.f32 %v208_v22, %v4328_v20 }
  0x91   :  { %2811 = vmatmul.msk.bf16.gmra.mxu0 %vm162_vm0, %v3895_v21  ;;  %v268_v24 = vmax.f32 %v209_v23, 0.0 }
  0x93   :  { %v293_v28 = vmul.f32 %v4336_v25, %v268_v24 }
  0x95   :  { %v318_v33 = vadd.f32 %v4341_v30, %v293_v28 }
  0x96   :  { %v210_v26 = vpop.f32.mrf.mxu0 }
  0x97   :  { %v211_v27 = vadd.f32 %v210_v26, %v4328_v20 }
  0x99   :  { %v269_v29 = vmax.f32 %v211_v27, 0.0 }
  0x9b   :  { %v294_v31 = vmul.f32 %v4336_v25, %v269_v29 }
  0x9d   :  { %v319_v34 = vadd.f32 %v4341_v30, %v294_v31 }
  0x9e   :  { %v213_v35 = vpop.f32.mrf.mxu0 }
  0x9f   :  { %v342_v36 = vpack.c.bf16 %v319_v34, %v318_v33  ;;  %v214_v37 = vadd.f32 %v213_v35, %v4328_v20 }
  0xa1   :  { %2812 = vmatmul.msk.bf16.gmra.mxu0 %vm162_vm0, %v3896_v32  ;;  %427 = vmatmul.bf16.vlgmr.msra.gmra.mxu1 %v342_v36  ;;  %v270_v38 = vmax.f32 %v214_v37, 0.0 }
  0xa3   :  { %v295_v41 = vmul.f32 %v4336_v25, %v270_v38 }
  0xa5   :  { %v320_v45 = vadd.f32 %v4341_v30, %v295_v41 }
  0xa6   :  { %v215_v39 = vpop.f32.mrf.mxu0 }
  0xa7   :  { %v216_v40 = vadd.f32 %v215_v39, %v4328_v20 }
  0xa9   :  { %v271_v42 = vmax.f32 %v216_v40, 0.0 }
  0xab   :  { %v296_v43 = vmul.f32 %v4336_v25, %v271_v42 }
  0xad   :  { %v321_v46 = vadd.f32 %v4341_v30, %v296_v43 }
  0xae   :  { %v218_v47 = vpop.f32.mrf.mxu0 }
  0xaf   :  { %v343_v48 = vpack.c.bf16 %v321_v46, %v320_v45  ;;  %v219_v49 = vadd.f32 %v218_v47, %v4328_v20 }
  0xb1   :  { %2813 = vmatmul.msk.bf16.gmra.mxu0 %vm162_vm0, %v3897_v44  ;;  %432 = vmatmul.bf16.gmra.mxu1 %v343_v48  ;;  %v272_v50 = vmax.f32 %v219_v49, 0.0 }
  0xb3   :  { %v297_v53 = vmul.f32 %v4336_v25, %v272_v50 }
  0xb5   :  { %v322_v57 = vadd.f32 %v4341_v30, %v297_v53 }
  0xb6   :  { %v220_v51 = vpop.f32.mrf.mxu0 }
  0xb7   :  { %v221_v52 = vadd.f32 %v220_v51, %v4328_v20 }
  0xb9   :  { %v273_v54 = vmax.f32 %v221_v52, 0.0 }
  0xbb   :  { %v298_v55 = vmul.f32 %v4336_v25, %v273_v54 }
  0xbd   :  { %v323_v58 = vadd.f32 %v4341_v30, %v298_v55 }
  0xbe   :  { %v223_v59 = vpop.f32.mrf.mxu0 }
  0xbf   :  { %v344_v60 = vpack.c.bf16 %v323_v58, %v322_v57  ;;  %v224_v61 = vadd.f32 %v223_v59, %v4328_v20 }
  0xc1   :  { %2814 = vmatmul.msk.bf16.gmra.mxu0 %vm162_vm0, %v3898_v56  ;;  %437 = vmatmul.bf16.gmra.mxu1 %v344_v60  ;;  %v274_v62 = vmax.f32 %v224_v61, 0.0 }
  0xc3   :  { %v299_v1 = vmul.f32 %v4336_v25, %v274_v62 }
  0xc5   :  { %v324_v4 = vadd.f32 %v4341_v30, %v299_v1 }
  0xc6   :  { %v225_v63 = vpop.f32.mrf.mxu0 }
  0xc7   :  { %v226_v0 = vadd.f32 %v225_v63, %v4328_v20 }
  0xc9   :  { %v275_v2 = vmax.f32 %v226_v0, 0.0 }
  0xcb   :  { %v300_v3 = vmul.f32 %v4336_v25, %v275_v2 }
  0xcd   :  { %v325_v5 = vadd.f32 %v4341_v30, %v300_v3 }
  0xce   :  { %v228_v6 = vpop.f32.mrf.mxu0 }
  0xcf   :  { %v345_v7 = vpack.c.bf16 %v325_v5, %v324_v4  ;;  %v229_v8 = vadd.f32 %v228_v6, %v4328_v20 }
  0xd1   :  { %442 = vmatmul.bf16.gmra.mxu1 %v345_v7  ;;  %v276_v9 = vmax.f32 %v229_v8, 0.0 }
  0xd3   :  { %v301_v12 = vmul.f32 %v4336_v25, %v276_v9 }
  0xd5   :  { %v326_v15 = vadd.f32 %v4341_v30, %v301_v12 }
  0xd6   :  { %v230_v10 = vpop.f32.mrf.mxu0 }
  0xd7   :  { %v231_v11 = vadd.f32 %v230_v10, %v4328_v20 }
  0xd9   :  { %v277_v13 = vmax.f32 %v231_v11, 0.0 }
  0xdb   :  { %v302_v14 = vmul.f32 %v4336_v25, %v277_v13 }
  0xdd   :  { %v327_v16 = vadd.f32 %v4341_v30, %v302_v14 }
  0xde   :  { %v233_v17 = vpop.f32.mrf.mxu0 }
  0xdf   :  { %v346_v18 = vpack.c.bf16 %v327_v16, %v326_v15  ;;  %v234_v21 = vadd.f32 %v233_v17, %v4328_v20 }
  0xe1   :  { %447 = vmatmul.bf16.gmra.mxu1 %v346_v18  ;;  %v278_v22 = vmax.f32 %v234_v21, 0.0 }
  0xe3   :  { %v303_v26 = vmul.f32 %v4336_v25, %v278_v22 }
  0xe5   :  { %v328_v29 = vadd.f32 %v4341_v30, %v303_v26 }
  0xe6   :  { %v235_v23 = vpop.f32.mrf.mxu0 }
  0xe7   :  { %v236_v24 = vadd.f32 %v235_v23, %v4328_v20 }
  0xe9   :  { %v279_v27 = vmax.f32 %v236_v24, 0.0 }
  0xeb   :  { %v304_v28 = vmul.f32 %v4336_v25, %v279_v27 }
  0xed   :  { %v329_v31 = vadd.f32 %v4341_v30, %v304_v28 }
  0xee   :  { %v238_v32 = vpop.f32.mrf.mxu0 }
  0xef   :  { %v347_v33 = vpack.c.bf16 %v329_v31, %v328_v29  ;;  %v239_v34 = vadd.f32 %v238_v32, %v4328_v20 }
  0xf1   :  { %452 = vmatmul.bf16.gmra.mxu1 %v347_v33  ;;  %v280_v35 = vmax.f32 %v239_v34, 0.0 }
  0xf3   :  { %v305_v38 = vmul.f32 %v4336_v25, %v280_v35  ;;  %v4424_v35 = vperm.slane %v4325_v19, 3 }
  0xf5   :  { %v330_v41 = vadd.f32 %v4341_v30, %v305_v38 }
  0xf6   :  { %v240_v36 = vpop.f32.mrf.mxu0 }
  0xf7   :  { %v241_v37 = vadd.f32 %v240_v36, %v4328_v20 }
  0xf9   :  { %v281_v39 = vmax.f32 %v241_v37, 0.0 }
  0xfb   :  { %v306_v40 = vmul.f32 %v4336_v25, %v281_v39 }
  0xfd   :  { %v331_v42 = vadd.f32 %v4341_v30, %v306_v40 }
  0xfe   :  { %v243_v43 = vpop.f32.mrf.mxu0 }
  0xff   :  { %v348_v44 = vpack.c.bf16 %v331_v42, %v330_v41  ;;  %v244_v45 = vadd.f32 %v243_v43, %v4328_v20 }
 0x101   :  { %457 = vmatmul.bf16.gmra.mxu1 %v348_v44  ;;  %v282_v46 = vmax.f32 %v244_v45, 0.0  ;;  %v4433_v45 = vperm.slane %v4325_v19, 4 }
 0x103   :  { %v307_v49 = vmul.f32 %v4336_v25, %v282_v46 }
 0x105   :  { %v332_v52 = vadd.f32 %v4341_v30, %v307_v49 }
 0x106   :  { %v245_v47 = vpop.f32.mrf.mxu0 }
 0x107   :  { %v246_v48 = vadd.f32 %v245_v47, %v4328_v20 }
 0x109   :  { %v283_v50 = vmax.f32 %v246_v48, 0.0 }
 0x10b   :  { %v308_v51 = vmul.f32 %v4336_v25, %v283_v50 }
 0x10d   :  { %v333_v53 = vadd.f32 %v4341_v30, %v308_v51  ;;  %v4440_v51 = vperm.slane %v4325_v19, 5 }
 0x10e   :  { %v248_v54 = vpop.f32.mrf.mxu0 }
 0x10f   :  { %v349_v55 = vpack.c.bf16 %v333_v53, %v332_v52  ;;  %v249_v56 = vadd.f32 %v248_v54, %v4328_v20 }
 0x111   :  { %462 = vmatmul.bf16.gmra.mxu1 %v349_v55  ;;  %v284_v57 = vmax.f32 %v249_v56, 0.0 }
 0x113   :  { %v309_v60 = vmul.f32 %v4336_v25, %v284_v57 }
 0x115   :  { %v334_v63 = vadd.f32 %v4341_v30, %v309_v60 }
 0x116   :  { %v250_v58 = vpop.f32.mrf.mxu0 }
 0x117   :  { %v251_v59 = vadd.f32 %v250_v58, %v4328_v20 }
 0x119   :  { %v285_v61 = vmax.f32 %v251_v59, 0.0 }
 0x11b   :  { %v310_v62 = vmul.f32 %v4336_v25, %v285_v61 }
 0x11d   :  { %v335_v0 = vadd.f32 %v4341_v30, %v310_v62 }
 0x11e   :  { %v253_v1 = vpop.f32.mrf.mxu0  ;;  %v428_v2 = vpop.f32.mrf.mxu1 }
 0x11f   :  { %v350_v3 = vpack.c.bf16 %v335_v0, %v334_v63  ;;  %v254_v4 = vadd.f32 %v253_v1, %v4328_v20  ;;  %v429_v40 = vadd.f32 %v428_v2, %v4424_v35 }
 0x121   :  { %467 = vmatmul.bf16.gmra.mxu1 %v350_v3  ;;  %v286_v5 = vmax.f32 %v254_v4, 0.0  ;;  %v488_v44 = vmax.f32 %v429_v40, 0.0 }
 0x123   :  { %v311_v9 = vmul.f32 %v4336_v25, %v286_v5 }
 0x125   :  { %v336_v12 = vadd.f32 %v4341_v30, %v311_v9 }
 0x126   :  { %v255_v6 = vpop.f32.mrf.mxu0  ;;  %v4407_v7 = vpop.f32.mrf.mxu1 }
 0x127   :  { %v256_v8 = vadd.f32 %v255_v6, %v4328_v20 }
 0x129   :  { %v287_v10 = vmax.f32 %v256_v8, 0.0 }
 0x12b   :  { %v312_v11 = vmul.f32 %v4336_v25, %v287_v10 }
 0x12d   :  { %v337_v13 = vadd.f32 %v4341_v30, %v312_v11 }
 0x12e   :  { %v258_v14 = vpop.f32.mrf.mxu0  ;;  %v433_v15 = vpop.f32.mrf.mxu1 }
 0x12f   :  { %v351_v16 = vpack.c.bf16 %v337_v13, %v336_v12  ;;  %v259_v17 = vadd.f32 %v258_v14, %v4328_v20  ;;  %v434_v56 = vadd.f32 %v433_v15, %v4424_v35  ;;  %v2921_v15 = vld [vmem:[%s4987_s3 + $0xf0] sm:$0xf] }
 0x131   :  { %472 = vmatmul.bf16.gmra.mxu1 %v351_v16  ;;  %v288_v18 = vmax.f32 %v259_v17, 0.0  ;;  %v490_v57 = vmax.f32 %v434_v56, 0.0  ;;  %v3941_v16 = vld [vmem:[%s4987_s3 + $0xf4] sm:$0xf0] }
 0x132   :  { %v2922_v17 = vor.u32 %v3941_v16, %v2921_v15  ;;  %v2865_v15 = vld [vmem:[%s4987_s3 + $0x80] sm:$0xf]  ;;  %v3927_v16 = vld [vmem:[%s4987_s3 + $0x84] sm:$0xf0] }
 0x133   :  { %v313_v24 = vmul.f32 %v4336_v25, %v288_v18  ;;  %v515_v59 = vmul.f32 %v4433_v45, %v490_v57  ;;  %v3940_v18 = vld [vmem:[%s4987_s3 + $0xf4] sm:$0xf]  ;;  %v2881_v57 = vld [vmem:[%s4987_s3 + $0xa0] sm:$0xf] }
 0x134   :  { %693 = vmatpush.bf16.msra.mxu2 %v2922_v17  ;;  %v3926_v17 = vld [vmem:[%s4987_s3 + $0x84] sm:$0xf] }
 0x135   :  { %v338_v28 = vadd.f32 %v4341_v30, %v313_v24  ;;  %v4458_v62 = vadd.f32 %v4440_v51, %v515_v59  ;;  %v2913_v24 = vld [vmem:[%s4987_s3 + $0xe0] sm:$0xf] }
 0x136   :  { %v260_v21 = vpop.f32.mrf.mxu0  ;;  %v4415_v22 = vpop.f32.mrf.mxu1 }
 0x137   :  { %v261_v23 = vadd.f32 %v260_v21, %v4328_v20  ;;  %v2923_v21 = vld [vmem:[%s4987_s3 + $0xf8] sm:$0xf0] }
 0x139   :  { %v289_v26 = vmax.f32 %v261_v23, 0.0  ;;  %v2926_v23 = vor.u32 %v3940_v18, %v2923_v21  ;;  %v2866_v21 = vor.u32 %v3927_v16, %v2865_v15  ;;  %v2961_v15 = vld [vmem:[%s4987_s3 + $0x40] sm:$0xf]  ;;  %v3919_v16 = vld [vmem:[%s4987_s3 + $0x44] sm:$0xf0] }
 0x13b   :  { %v314_v27 = vmul.f32 %v4336_v25, %v289_v26  ;;  %717 = vmatpush.bf16.msra.mxu3 %v2926_v23  ;;  %v3939_v26 = vld [vmem:[%s4987_s3 + $0xe4] sm:$0xf0]  ;;  %v2867_v23 = vld [vmem:[%s4987_s3 + $0x88] sm:$0xf0] }
 0x13d   :  { %v339_v29 = vadd.f32 %v4341_v30, %v314_v27  ;;  %v3938_v27 = vld [vmem:[%s4987_s3 + $0xe4] sm:$0xf] }
 0x13e   :  { %v263_v31 = vpop.f32.mrf.mxu0  ;;  %v438_v32 = vpop.f32.mrf.mxu1 }
 0x13f   :  { %v352_v33 = vpack.c.bf16 %v339_v29, %v338_v28  ;;  %v264_v34 = vadd.f32 %v263_v31, %v4328_v20  ;;  %v439_v2 = vadd.f32 %v438_v32, %v4424_v35  ;;  %v2914_v29 = vor.u32 %v3939_v26, %v2913_v24  ;;  %v2915_v31 = vld [vmem:[%s4987_s3 + $0xe8] sm:$0xf0] }
 0x140   :  { %v2918_v32 = vor.u32 %v3938_v27, %v2915_v31  ;;  %v2870_v24 = vor.u32 %v3926_v17, %v2867_v23  ;;  %v3918_v17 = vld [vmem:[%s4987_s3 + $0x44] sm:$0xf]  ;;  %v2962_v23 = vor.u32 %v3919_v16, %v2961_v15 }
 0x141   :  { %477 = vmatmul.bf16.gmra.mxu1 %v352_v33  ;;  %v290_v36 = vmax.f32 %v264_v34, 0.0  ;;  %v492_v3 = vmax.f32 %v439_v2, 0.0  ;;  %694 = vmatpush.bf16.msra.mxu2 %v2914_v29  ;;  %v2905_v33 = vld [vmem:[%s4987_s3 + $0xd0] sm:$0xf]  ;;  %v3937_v34 = vld [vmem:[%s4987_s3 + $0xd4] sm:$0xf0] }
 0x142   :  { %718 = vmatpush.bf16.msra.mxu3 %v2918_v32 }
 0x143   :  { %v315_v41 = vmul.f32 %v4336_v25, %v290_v36  ;;  %v517_v6 = vmul.f32 %v4433_v45, %v492_v3  ;;  %v2906_v36 = vor.u32 %v3937_v34, %v2905_v33  ;;  %v2873_v3 = vld [vmem:[%s4987_s3 + $0x90] sm:$0xf]  ;;  %v3925_v34 = vld [vmem:[%s4987_s3 + $0x74] sm:$0xf0] }
 0x144   :  { %v2985_v33 = vld [vmem:[%s4987_s3 + $0x70] sm:$0xf] }
 0x145   :  { %v340_v46 = vadd.f32 %v4341_v30, %v315_v41  ;;  %v4472_v10 = vadd.f32 %v4440_v51, %v517_v6  ;;  %695 = vmatpush.bf16.msra.mxu2 %v2906_v36  ;;  %v2897_v41 = vld [vmem:[%s4987_s3 + $0xc0] sm:$0xf]  ;;  %v3928_v6 = vld [vmem:[%s4987_s3 + $0x94] sm:$0xf]  ;;  %v2986_v36 = vor.u32 %v3925_v34, %v2985_v33 }
 0x146   :  { %v265_v37 = vpop.f32.mrf.mxu0  ;;  %v4426_v38 = vpop.f32.mrf.mxu1 }
 0x147   :  { %v266_v39 = vadd.f32 %v265_v37, %v4328_v20  ;;  %v513_v20 = vmul.f32 %v4433_v45, %v488_v44  ;;  %v3936_v37 = vld [vmem:[%s4987_s3 + $0xd4] sm:$0xf] }
 0x149   :  { %v291_v42 = vmax.f32 %v266_v39, 0.0  ;;  %v4444_v53 = vadd.f32 %v4440_v51, %v513_v20  ;;  %v2907_v39 = vld [vmem:[%s4987_s3 + $0xd8] sm:$0xf0] }
 0x14a   :  { %v2910_v40 = vor.u32 %v3936_v37, %v2907_v39  ;;  %v3924_v37 = vld [vmem:[%s4987_s3 + $0x74] sm:$0xf]  ;;  %v2987_v39 = vld [vmem:[%s4987_s3 + $0x78] sm:$0xf0] }
 0x14b   :  { %v316_v43 = vmul.f32 %v4336_v25, %v291_v42  ;;  %v3935_v42 = vld [vmem:[%s4987_s3 + $0xc4] sm:$0xf0] }
 0x14c   :  { %719 = vmatpush.bf16.msra.mxu3 %v2910_v40  ;;  %v2990_v40 = vor.u32 %v3924_v37, %v2987_v39  ;;  %v2953_v37 = vld [vmem:[%s4987_s3 + $0x30] sm:$0xf]  ;;  %v3917_v39 = vld [vmem:[%s4987_s3 + $0x34] sm:$0xf0] }
 0x14d   :  { %v341_v47 = vadd.f32 %v4341_v30, %v316_v43  ;;  %v3934_v43 = vld [vmem:[%s4987_s3 + $0xc4] sm:$0xf] }
 0x14e   :  { %v443_v48 = vpop.f32.mrf.mxu1 }
 0x14f   :  { %v444_v49 = vadd.f32 %v443_v48, %v4424_v35  ;;  %v353_v50 = vpack.c.bf16 %v341_v47, %v340_v46  ;;  %v2898_v46 = vor.u32 %v3935_v42, %v2897_v41  ;;  %v2899_v47 = vld [vmem:[%s4987_s3 + $0xc8] sm:$0xf0]  ;;  %v2977_v42 = vld [vmem:[%s4987_s3 + $0x60] sm:$0xf] }
 0x150   :  { %v2902_v48 = vor.u32 %v3934_v43, %v2899_v47  ;;  %v3923_v43 = vld [vmem:[%s4987_s3 + $0x64] sm:$0xf0] }
 0x151   :  { %v494_v52 = vmax.f32 %v444_v49, 0.0  ;;  %482 = vmatmul.bf16.gmra.mxu1 %v353_v50  ;;  %696 = vmatpush.bf16.msra.mxu2 %v2898_v46  ;;  %v2889_v49 = vld [vmem:[%s4987_s3 + $0xb0] sm:$0xf]  ;;  %v3933_v50 = vld [vmem:[%s4987_s3 + $0xb4] sm:$0xf0] }
 0x152   :  { %720 = vmatpush.bf16.msra.mxu3 %v2902_v48  ;;  %v2890_v20 = vor.u32 %v3933_v50, %v2889_v49  ;;  %v3922_v46 = vld [vmem:[%s4987_s3 + $0x64] sm:$0xf]  ;;  %v2978_v48 = vor.u32 %v3923_v43, %v2977_v42  ;;  %v2979_v49 = vld [vmem:[%s4987_s3 + $0x68] sm:$0xf0]  ;;  %v3915_v42 = vld [vmem:[%s4987_s3 + $0x24] sm:$0xf0] }
 0x153   :  { %v519_v25 = vmul.f32 %v4433_v45, %v494_v52  ;;  %v3932_v52 = vld [vmem:[%s4987_s3 + $0xb4] sm:$0xf]  ;;  %v3914_v43 = vld [vmem:[%s4987_s3 + $0x24] sm:$0xf] }
 0x155   :  { %v4447_v54 = vadd.f32 %v4440_v51, %v519_v25  ;;  %v2891_v25 = vld [vmem:[%s4987_s3 + $0xb8] sm:$0xf0]  ;;  %697 = vmatpush.bf16.msra.mxu2 %v2890_v20 }
 0x156   :  { %v4449_v30 = vpop.f32.mrf.mxu1  ;;  %v2894_v56 = vor.u32 %v3932_v52, %v2891_v25  ;;  %v2982_v52 = vor.u32 %v3922_v46, %v2979_v49 }
 0x157   :  { %v562_v55 = vmax.f32 %v4444_v53, %v4447_v54 }
 0x158   :  { %721 = vmatpush.bf16.msra.mxu3 %v2894_v56 }
 0x15e   :  { %v448_v19 = vpop.f32.mrf.mxu1 }
 0x15f   :  { %v449_v58 = vadd.f32 %v448_v19, %v4424_v35  ;;  %v3931_v19 = vld [vmem:[%s4987_s3 + $0xa4] sm:$0xf0] }
 0x161   :  { %v496_v60 = vmax.f32 %v449_v58, 0.0  ;;  %v3930_v58 = vld [vmem:[%s4987_s3 + $0xa4] sm:$0xf] }
 0x163   :  { %v521_v61 = vmul.f32 %v4433_v45, %v496_v60  ;;  %v2882_v60 = vor.u32 %v3931_v19, %v2881_v57  ;;  %v2969_v19 = vld [vmem:[%s4987_s3 + $0x50] sm:$0xf] }
 0x165   :  { %v4461_v63 = vadd.f32 %v4440_v51, %v521_v61  ;;  %v2883_v61 = vld [vmem:[%s4987_s3 + $0xa8] sm:$0xf0]  ;;  %698 = vmatpush.bf16.msra.mxu2 %v2882_v60 }
 0x166   :  { %v4463_v0 = vpop.f32.mrf.mxu1  ;;  %v2886_v2 = vor.u32 %v3930_v58, %v2883_v61  ;;  %v3921_v58 = vld [vmem:[%s4987_s3 + $0x54] sm:$0xf0]  ;;  %v3920_v61 = vld [vmem:[%s4987_s3 + $0x54] sm:$0xf] }
 0x167   :  { %v564_v1 = vmax.f32 %v4458_v62, %v4461_v63  ;;  %v2970_v60 = vor.u32 %v3921_v58, %v2969_v19  ;;  %v3099_v62 = vld [vmem:[#allocation2 + $0xd8] sm:$0xf0]  ;;  %v3999_v63 = vld [vmem:[#allocation2 + $0x1cc] sm:$0xf] }
 0x168   :  { %722 = vmatpush.bf16.msra.mxu3 %v2886_v2  ;;  %v2971_v2 = vld [vmem:[%s4987_s3 + $0x58] sm:$0xf0] }
 0x16e   :  { %v453_v4 = vpop.f32.mrf.mxu1 }
 0x16f   :  { %v454_v5 = vadd.f32 %v453_v4, %v4424_v35  ;;  %v3929_v4 = vld [vmem:[%s4987_s3 + $0x94] sm:$0xf0] }
 0x171   :  { %v498_v8 = vmax.f32 %v454_v5, 0.0  ;;  %v2874_v5 = vor.u32 %v3929_v4, %v2873_v3 }
 0x173   :  { %v523_v9 = vmul.f32 %v4433_v45, %v498_v8  ;;  %v2875_v8 = vld [vmem:[%s4987_s3 + $0x98] sm:$0xf0]  ;;  %699 = vmatpush.bf16.msra.mxu2 %v2874_v5  ;;  %v2974_v5 = vor.u32 %v3920_v61, %v2971_v2 }
 0x175   :  { %v4475_v11 = vadd.f32 %v4440_v51, %v523_v9  ;;  %v2878_v9 = vor.u32 %v3928_v6, %v2875_v8 }
 0x176   :  { %v4477_v12 = vpop.f32.mrf.mxu1 }
 0x177   :  { %v566_v13 = vmax.f32 %v4472_v10, %v4475_v11  ;;  %723 = vmatpush.bf16.msra.mxu3 %v2878_v9  ;;  %700 = vmatpush.bf16.msra.mxu2 %v2866_v21  ;;  %v456_v54 = vadd.f32 %v4477_v12, %v4424_v35  ;;  %v3089_v10 = vld [vmem:[#allocation2 + $0xc0] sm:$0xf]  ;;  %v3968_v11 = vld [vmem:[#allocation2 + $0xcc] sm:$0xf0] }
 0x17b   :  { %724 = vmatpush.bf16.msra.mxu3 %v2870_v24  ;;  %821 = vmatpush.bf16.msrb.mxu2 %v2986_v36  ;;  %v2963_v24 = vld [vmem:[%s4987_s3 + $0x48] sm:$0xf0] }
 0x17e   :  { %v4481_v14 = vpop.f32.mrf.mxu1 }
 0x17f   :  { %v459_v31 = vadd.f32 %v4481_v14, %v4424_v35  ;;  %845 = vmatpush.bf16.msrb.mxu3 %v2990_v40  ;;  %822 = vmatpush.bf16.msrb.mxu2 %v2978_v48  ;;  %v2954_v40 = vor.u32 %v3917_v39, %v2953_v37 }
 0x183   :  { %846 = vmatpush.bf16.msrb.mxu3 %v2982_v52  ;;  %823 = vmatpush.bf16.msrb.mxu2 %v2970_v60  ;;  %v3913_v52 = vld [vmem:[%s4987_s3 + $0x14] sm:$0xf0] }
 0x186   :  { %v460_v28 = vpop.f32.mrf.mxu1 }
 0x187   :  { %v461_v32 = vadd.f32 %v460_v28, %v4424_v35  ;;  %v500_v28 = vmax.f32 %v459_v31, 0.0  ;;  %847 = vmatpush.bf16.msrb.mxu3 %v2974_v5  ;;  %824 = vmatpush.bf16.msrb.mxu2 %v2962_v23  ;;  %v2929_v5 = vld [vmem:[%s4987_s3] sm:$0xf] }
 0x189   :  { %v501_v41 = vmax.f32 %v461_v32, 0.0  ;;  %v525_v25 = vmul.f32 %v4433_v45, %v500_v28  ;;  %v2966_v32 = vor.u32 %v3918_v17, %v2963_v24  ;;  %v3916_v28 = vld [vmem:[%s4987_s3 + $0x34] sm:$0xf] }
 0x18b   :  { %v526_v56 = vmul.f32 %v4433_v45, %v501_v41  ;;  %v550_v6 = vadd.f32 %v4440_v51, %v525_v25  ;;  %848 = vmatpush.bf16.msrb.mxu3 %v2966_v32  ;;  %v2945_v41 = vld [vmem:[%s4987_s3 + $0x20] sm:$0xf]  ;;  %825 = vmatpush.bf16.msrb.mxu2 %v2954_v40 }
 0x18c   :  { %v2946_v46 = vor.u32 %v3915_v42, %v2945_v41 }
 0x18d   :  { %v551_v8 = vadd.f32 %v4440_v51, %v526_v56  ;;  %v3912_v56 = vld [vmem:[%s4987_s3 + $0x14] sm:$0xf] }
 0x18e   :  { %v4528_v44 = vpop.f32.mrf.mxu1 }
 0x18f   :  { %v464_v33 = vadd.f32 %v4528_v44, %v4424_v35  ;;  %v2955_v44 = vld [vmem:[%s4987_s3 + $0x38] sm:$0xf0]  ;;  %826 = vmatpush.bf16.msrb.mxu2 %v2946_v46  ;;  %v446_v46 = vadd.f32 %v4449_v30, %v4424_v35 }
 0x191   :  { %v502_v48 = vmax.f32 %v464_v33, 0.0 }
 0x193   :  { %v527_v61 = vmul.f32 %v4433_v45, %v502_v48 }
 0x196   :  { %v4554_v59 = vpop.f32.mrf.mxu1 }
 0x197   :  { %v466_v34 = vadd.f32 %v4554_v59, %v4424_v35  ;;  %v2958_v59 = vor.u32 %v3916_v28, %v2955_v44 }
 0x199   :  { %v503_v49 = vmax.f32 %v466_v34, 0.0  ;;  %849 = vmatpush.bf16.msrb.mxu3 %v2958_v59 }
 0x19b   :  { %v528_v2 = vmul.f32 %v4433_v45, %v503_v49 }
 0x19d   :  { %v553_v23 = vadd.f32 %v4440_v51, %v528_v2 }
 0x19e   :  { %v4580_v18 = vpop.f32.mrf.mxu1 }
 0x19f   :  { %v469_v34 = vadd.f32 %v4580_v18, %v4424_v35 }
 0x1a6   :  { %v4585_v26 = vpop.f32.mrf.mxu1 }
 0x1ae   :  { %v473_v27 = vpop.f32.mrf.mxu1 }
 0x1af   :  { %v474_v29 = vadd.f32 %v473_v27, %v4424_v35 }
 0x1b1   :  { %v506_v14 = vmax.f32 %v474_v29, 0.0 }
 0x1b3   :  { %v531_v50 = vmul.f32 %v4433_v45, %v506_v14 }
 0x1b5   :  { %v556_v3 = vadd.f32 %v4440_v51, %v531_v50 }
 0x1b6   :  { %v475_v47 = vpop.f32.mrf.mxu1 }
 0x1b7   :  { %v476_v20 = vadd.f32 %v475_v47, %v4424_v35  ;;  %v568_v29 = vmax.f32 %v550_v6, %v556_v3  ;;  %v2947_v47 = vld [vmem:[%s4987_s3 + $0x28] sm:$0xf0]  ;;  %v3911_v6 = vld [vmem:[%s4987_s3 + $0x4] sm:$0xf0] }
 0x1b8   :  { %v2950_v50 = vor.u32 %v3914_v43, %v2947_v47  ;;  %v2930_v17 = vor.u32 %v3911_v6, %v2929_v5  ;;  %v3971_v6 = vld [vmem:[#allocation2 + $0xec] sm:$0xf] }
 0x1b9   :  { %v507_v57 = vmax.f32 %v476_v20, 0.0  ;;  %v2937_v20 = vld [vmem:[%s4987_s3 + $0x10] sm:$0xf] }
 0x1ba   :  { %v2938_v60 = vor.u32 %v3913_v52, %v2937_v20  ;;  %850 = vmatpush.bf16.msrb.mxu3 %v2950_v50  ;;  %v431_v50 = vadd.f32 %v4407_v7, %v4424_v35  ;;  %v436_v7 = vadd.f32 %v4415_v22, %v4424_v35 }
 0x1bb   :  { %v532_v4 = vmul.f32 %v4433_v45, %v507_v57  ;;  %v2939_v57 = vld [vmem:[%s4987_s3 + $0x18] sm:$0xf0] }
 0x1bc   :  { %827 = vmatpush.bf16.msrb.mxu2 %v2938_v60  ;;  %v491_v5 = vmax.f32 %v436_v7, 0.0  ;;  %v3067_v7 = vld [vmem:[#allocation2 + $0x98] sm:$0xf0] }
 0x1bd   :  { %v557_v9 = vadd.f32 %v4440_v51, %v532_v4  ;;  %v2942_v4 = vor.u32 %v3912_v56, %v2939_v57  ;;  %v489_v57 = vmax.f32 %v431_v50, 0.0  ;;  %v3964_v50 = vld [vmem:[#allocation2 + $0xac] sm:$0xf0] }
 0x1be   :  { %v478_v21 = vpop.f32.mrf.mxu1 }
 0x1bf   :  { %v479_v27 = vadd.f32 %v478_v21, %v4424_v35  ;;  %v569_v31 = vmax.f32 %v551_v8, %v557_v9  ;;  %v3910_v8 = vld [vmem:[%s4987_s3 + $0x4] sm:$0xf]  ;;  %v2931_v9 = vld [vmem:[%s4987_s3 + $0x8] sm:$0xf0]  ;;  %v552_v21 = vadd.f32 %v4440_v51, %v527_v61  ;;  %851 = vmatpush.bf16.msrb.mxu3 %v2942_v4  ;;  %v514_v30 = vmul.f32 %v4433_v45, %v489_v57 }
 0x1c0   :  { %828 = vmatpush.bf16.msrb.mxu2 %v2930_v17  ;;  %v451_v61 = vadd.f32 %v4463_v0, %v4424_v35 }
 0x1c1   :  { %v593_v36 = vpack.c.bf16 %v569_v31, %v568_v29  ;;  %v508_v14 = vmax.f32 %v479_v27, 0.0  ;;  %v2934_v27 = vor.u32 %v3910_v8, %v2931_v9  ;;  %v539_v60 = vadd.f32 %v4440_v51, %v514_v30  ;;  %v3115_v8 = vld [vmem:[#allocation2 + $0xf8] sm:$0xf0]  ;;  %v4003_v9 = vld [vmem:[#allocation2 + $0x1ec] sm:$0xf] }
 0x1c2   :  { %v3960_v30 = vld [vmem:[#allocation2 + $0x8c] sm:$0xf0] }
 0x1c3   :  { %701 = vmatmul.bf16.vlgmr.msra.gmra.mxu2 %v593_v36  ;;  %725 = vmatmul.bf16.vlgmr.msra.gmra.mxu3 %v593_v36  ;;  %v533_v19 = vmul.f32 %v4433_v45, %v508_v14  ;;  %v471_v36 = vadd.f32 %v4585_v26, %v4424_v35  ;;  %v504_v14 = vmax.f32 %v469_v34, 0.0 }
 0x1c4   :  { %852 = vmatpush.bf16.msrb.mxu3 %v2934_v27 }
 0x1c5   :  { %v558_v15 = vadd.f32 %v4440_v51, %v533_v19  ;;  %v505_v40 = vmax.f32 %v471_v36, 0.0  ;;  %v529_v41 = vmul.f32 %v4433_v45, %v504_v14  ;;  %v3227_v36 = vld [vmem:[#allocation2 + $0x1d8] sm:$0xf0]  ;;  %v3233_v14 = vld [vmem:[#allocation2 + $0x1e0] sm:$0xf] }
 0x1c6   :  { %v480_v25 = vpop.f32.mrf.mxu1 }
 0x1c7   :  { %v481_v58 = vadd.f32 %v480_v25, %v4424_v35  ;;  %v570_v32 = vmax.f32 %v552_v21, %v558_v15  ;;  %v530_v42 = vmul.f32 %v4433_v45, %v505_v40  ;;  %v554_v47 = vadd.f32 %v4440_v51, %v529_v41 }
 0x1c8   :  { %v495_v25 = vmax.f32 %v446_v46, 0.0  ;;  %v3118_v15 = vor.u32 %v3971_v6, %v3115_v8  ;;  %v516_v21 = vmul.f32 %v4433_v45, %v491_v5  ;;  %v3991_v8 = vld [vmem:[#allocation2 + $0x18c] sm:$0xf] }
 0x1c9   :  { %v509_v3 = vmax.f32 %v481_v58, 0.0  ;;  %v555_v48 = vadd.f32 %v4440_v51, %v530_v42 }
 0x1ca   :  { %v520_v19 = vmul.f32 %v4433_v45, %v495_v25  ;;  %1378 = vmatpush.bf16.msrb.mxu0 %v3118_v15  ;;  %v541_v53 = vadd.f32 %v4440_v51, %v516_v21  ;;  %v3201_v25 = vld [vmem:[#allocation2 + $0x1a0] sm:$0xf]  ;;  %v3988_v21 = vld [vmem:[#allocation2 + $0x16c] sm:$0xf0] }
 0x1cb   :  { %v534_v16 = vmul.f32 %v4433_v45, %v509_v3  ;;  %v497_v3 = vmax.f32 %v451_v61, 0.0  ;;  %v3992_v61 = vld [vmem:[#allocation2 + $0x18c] sm:$0xf0]  ;;  %v3041_v15 = vld [vmem:[#allocation2 + $0x60] sm:$0xf] }
 0x1cc   :  { %v545_v58 = vadd.f32 %v4440_v51, %v520_v19  ;;  %v3057_v19 = vld [vmem:[#allocation2 + $0x80] sm:$0xf] }
 0x1cd   :  { %v559_v24 = vadd.f32 %v4440_v51, %v534_v16  ;;  %v3243_v16 = vld [vmem:[#allocation2 + $0x1f8] sm:$0xf0]  ;;  %v522_v17 = vmul.f32 %v4433_v45, %v497_v3 }
 0x1ce   :  { %v483_v29 = vpop.f32.mrf.mxu1  ;;  %v563_v2 = vmax.f32 %v539_v60, %v545_v58  ;;  %v3246_v0 = vor.u32 %v4003_v9, %v3243_v16  ;;  %v3185_v58 = vld [vmem:[#allocation2 + $0x180] sm:$0xf]  ;;  %v3058_v60 = vor.u32 %v3960_v30, %v3057_v19  ;;  %v3195_v9 = vld [vmem:[#allocation2 + $0x198] sm:$0xf0]  ;;  %v3975_v30 = vld [vmem:[#allocation2 + $0x10c] sm:$0xf] }
 0x1cf   :  { %v484_v31 = vadd.f32 %v483_v29, %v4424_v35  ;;  %v571_v33 = vmax.f32 %v553_v23, %v559_v24  ;;  %v547_v22 = vadd.f32 %v4440_v51, %v522_v17  ;;  %v441_v23 = vadd.f32 %v4426_v38, %v4424_v35  ;;  %v3967_v38 = vld [vmem:[#allocation2 + $0xcc] sm:$0xf]  ;;  %v3956_v17 = vld [vmem:[#allocation2 + $0x6c] sm:$0xf0] }
 0x1d0   :  { %v574_v4 = vpack.c.bf16 %v563_v2, %v562_v55  ;;  %1391 = vmatpush.bf16.msrb.mxu1 %v3246_v0  ;;  %v499_v24 = vmax.f32 %v456_v54, 0.0  ;;  %v3959_v2 = vld [vmem:[#allocation2 + $0x8c] sm:$0xf]  ;;  %v3186_v5 = vor.u32 %v3992_v61, %v3185_v58  ;;  %v3198_v16 = vor.u32 %v3991_v8, %v3195_v9  ;;  %v3169_v0 = vld [vmem:[#allocation2 + $0x160] sm:$0xf] }
 0x1d1   :  { %v594_v37 = vpack.c.bf16 %v571_v33, %v570_v32  ;;  %v510_v39 = vmax.f32 %v484_v31, 0.0  ;;  %v565_v55 = vmax.f32 %v541_v53, %v547_v22  ;;  %v493_v29 = vmax.f32 %v441_v23, 0.0  ;;  %v3955_v54 = vld [vmem:[#allocation2 + $0x6c] sm:$0xf]  ;;  %v3131_v58 = vld [vmem:[#allocation2 + $0x118] sm:$0xf0] }
 0x1d2   :  { %v524_v31 = vmul.f32 %v4433_v45, %v499_v24  ;;  %v3070_v6 = vor.u32 %v3959_v2, %v3067_v7  ;;  %v3042_v22 = vor.u32 %v3956_v17, %v3041_v15  ;;  %v3170_v53 = vor.u32 %v3988_v21, %v3169_v0  ;;  %v3987_v23 = vld [vmem:[#allocation2 + $0x16c] sm:$0xf]  ;;  %v3107_v2 = vld [vmem:[#allocation2 + $0xf0] sm:$0xf0]  ;;  %v4002_v7 = vld [vmem:[#allocation2 + $0x1e4] sm:$0xf] }
 0x1d3   :  { %706 = vmatmul.bf16.gmra.mxu2 %v594_v37  ;;  %730 = vmatmul.bf16.gmra.mxu3 %v594_v37  ;;  %v535_v44 = vmul.f32 %v4433_v45, %v510_v39  ;;  %v575_v27 = vpack.c.bf16 %v565_v55, %v564_v1  ;;  %v518_v32 = vmul.f32 %v4433_v45, %v493_v29  ;;  %v3972_v39 = vld [vmem:[#allocation2 + $0xec] sm:$0xf0]  ;;  %v3051_v55 = vld [vmem:[#allocation2 + $0x78] sm:$0xf0]  ;;  %v4034_v9 = vld [vmem:[#allocation2 + $0x2e4] sm:$0xf] }
 0x1d4   :  { %v549_v33 = vadd.f32 %v4440_v51, %v524_v31  ;;  %v3102_v1 = vor.u32 %v3967_v38, %v3099_v62  ;;  %v3230_v37 = vor.u32 %v3999_v63, %v3227_v36  ;;  %v3054_v24 = vor.u32 %v3955_v54, %v3051_v55  ;;  %v3025_v31 = vld [vmem:[#allocation2 + $0x40] sm:$0xf]  ;;  %v3035_v38 = vld [vmem:[#allocation2 + $0x58] sm:$0xf0]  ;;  %v3363_v15 = vld [vmem:[#allocation2 + $0x2f0] sm:$0xf0] }
 0x1d5   :  { %v560_v43 = vadd.f32 %v4440_v51, %v535_v44  ;;  %v543_v12 = vadd.f32 %v4440_v51, %v518_v32  ;;  %v3090_v44 = vor.u32 %v3968_v11, %v3089_v10  ;;  %v3952_v32 = vld [vmem:[#allocation2 + $0x4c] sm:$0xf0]  ;;  %v3947_v11 = vld [vmem:[#allocation2 + $0x2c] sm:$0xf]  ;;  %v3134_v61 = vor.u32 %v3975_v30, %v3131_v58  ;;  %v3491_v0 = vld [vmem:[#allocation2 + $0x3f0] sm:$0xf0] }
 0x1d6   :  { %v485_v28 = vpop.f32.mrf.mxu1  ;;  %1379 = vmatpush.bf16.msrb.mxu0 %v3102_v1  ;;  %1392 = vmatpush.bf16.msrb.mxu1 %v3230_v37  ;;  %v3983_v37 = vld [vmem:[#allocation2 + $0x14c] sm:$0xf]  ;;  %v3980_v10 = vld [vmem:[#allocation2 + $0x12c] sm:$0xf0]  ;;  %v3366_v17 = vor.u32 %v4034_v9, %v3363_v15  ;;  %v3966_v21 = vld [vmem:[#allocation2 + $0xc4] sm:$0xf] }
 0x1d7   :  { %v486_v59 = vadd.f32 %v485_v28, %v4424_v35  ;;  %v572_v20 = vmax.f32 %v554_v47, %v560_v43  ;;  %v567_v34 = vmax.f32 %v543_v12, %v549_v33  ;;  %v3083_v43 = vld [vmem:[#allocation2 + $0xb8] sm:$0xf0]  ;;  %v3153_v33 = vld [vmem:[#allocation2 + $0x140] sm:$0xf]  ;;  %v3026_v12 = vor.u32 %v3952_v32, %v3025_v31  ;;  %v3998_v55 = vld [vmem:[#allocation2 + $0x1c4] sm:$0xf] }
 0x1d8   :  { %v4062_v31 = vld [vmem:[#allocation2 + $0x3c4] sm:$0xf]  ;;  %v3475_v32 = vld [vmem:[#allocation2 + $0x3d0] sm:$0xf0] }
 0x1d9   :  { %v511_v18 = vmax.f32 %v486_v59, 0.0  ;;  %v576_v35 = vpack.c.bf16 %v567_v34, %v566_v13  ;;  %v3217_v13 = vld [vmem:[#allocation2 + $0x1c0] sm:$0xf]  ;;  %v4000_v59 = vld [vmem:[#allocation2 + $0x1cc] sm:$0xf0] }
 0x1da   :  { %v3218_v46 = vor.u32 %v4000_v59, %v3217_v13  ;;  %v3984_v34 = vld [vmem:[#allocation2 + $0x14c] sm:$0xf0]  ;;  %v3019_v13 = vld [vmem:[#allocation2 + $0x38] sm:$0xf0]  ;;  %v3427_v9 = vld [vmem:[#allocation2 + $0x370] sm:$0xf0] }
 0x1db   :  { %v536_v26 = vmul.f32 %v4433_v45, %v511_v18  ;;  %v3105_v45 = vld [vmem:[#allocation2 + $0xe0] sm:$0xf]  ;;  %v3963_v18 = vld [vmem:[#allocation2 + $0xac] sm:$0xf]  ;;  %v3154_v1 = vor.u32 %v3984_v34, %v3153_v33  ;;  %v3022_v59 = vor.u32 %v3947_v11, %v3019_v13  ;;  %v3962_v34 = vld [vmem:[#allocation2 + $0xa4] sm:$0xf] }
 0x1dc   :  { %v3106_v40 = vor.u32 %v3972_v39, %v3105_v45  ;;  %v3086_v47 = vor.u32 %v3963_v18, %v3083_v43  ;;  %v3163_v45 = vld [vmem:[#allocation2 + $0x158] sm:$0xf0]  ;;  %v3979_v18 = vld [vmem:[#allocation2 + $0x12c] sm:$0xf]  ;;  %v3958_v13 = vld [vmem:[#allocation2 + $0x84] sm:$0xf] }
 0x1dd   :  { %v561_v49 = vadd.f32 %v4440_v51, %v536_v26  ;;  %v4004_v51 = vld [vmem:[#allocation2 + $0x1ec] sm:$0xf0]  ;;  %v3995_v26 = vld [vmem:[#allocation2 + $0x1ac] sm:$0xf]  ;;  %v3166_v39 = vor.u32 %v3983_v37, %v3163_v45  ;;  %v3147_v43 = vld [vmem:[#allocation2 + $0x138] sm:$0xf0] }
 0x1de   :  { %v3234_v28 = vor.u32 %v4004_v51, %v3233_v14  ;;  %1300 = vmatpush.bf16.msra.mxu2 %v3106_v40  ;;  %1380 = vmatpush.bf16.msrb.mxu0 %v3086_v47  ;;  %v3009_v14 = vld [vmem:[#allocation2 + $0x20] sm:$0xf]  ;;  %v3948_v40 = vld [vmem:[#allocation2 + $0x2c] sm:$0xf0]  ;;  %v3203_v45 = vld [vmem:[#allocation2 + $0x1b0] sm:$0xf0] }
 0x1df   :  { %v573_v52 = vmax.f32 %v555_v48, %v561_v49  ;;  %v3211_v48 = vld [vmem:[#allocation2 + $0x1b8] sm:$0xf0]  ;;  %v3073_v49 = vld [vmem:[#allocation2 + $0xa0] sm:$0xf]  ;;  %v3944_v47 = vld [vmem:[#allocation2 + $0xc] sm:$0xf0] }
 0x1e0   :  { %1313 = vmatpush.bf16.msra.mxu3 %v3234_v28  ;;  %v3137_v51 = vld [vmem:[#allocation2 + $0x120] sm:$0xf]  ;;  %v3010_v28 = vor.u32 %v3948_v40, %v3009_v14  ;;  %v3331_v14 = vld [vmem:[#allocation2 + $0x2b0] sm:$0xf0] }
 0x1e1   :  { %v595_v56 = vpack.c.bf16 %v573_v52, %v572_v20  ;;  %v3214_v20 = vor.u32 %v3995_v26, %v3211_v48  ;;  %v3074_v52 = vor.u32 %v3964_v50, %v3073_v49  ;;  %v3150_v26 = vor.u32 %v3979_v18, %v3147_v43  ;;  %v3121_v48 = vld [vmem:[#allocation2 + $0x100] sm:$0xf]  ;;  %v3976_v50 = vld [vmem:[#allocation2 + $0x10c] sm:$0xf0]  ;;  %v3187_v43 = vld [vmem:[#allocation2 + $0x190] sm:$0xf0] }
 0x1e2   :  { %1301 = vmatpush.bf16.msra.mxu2 %v3090_v44  ;;  %1381 = vmatpush.bf16.msrb.mxu0 %v3070_v6  ;;  %v3138_v44 = vor.u32 %v3980_v10, %v3137_v51  ;;  %v3459_v10 = vld [vmem:[#allocation2 + $0x3b0] sm:$0xf0] }
 0x1e3   :  { %711 = vmatmul.bf16.gmra.mxu2 %v595_v56  ;;  %735 = vmatmul.bf16.gmra.mxu3 %v595_v56  ;;  %v3996_v56 = vld [vmem:[#allocation2 + $0x1ac] sm:$0xf0] }
 0x1e4   :  { %1314 = vmatpush.bf16.msra.mxu3 %v3218_v46  ;;  %v3202_v57 = vor.u32 %v3996_v56, %v3201_v25  ;;  %1393 = vmatpush.bf16.msrb.mxu1 %v3214_v20  ;;  %v2993_v46 = vld [vmem:[#allocation2] sm:$0xf]  ;;  %v3943_v20 = vld [vmem:[#allocation2 + $0xc] sm:$0xf] }
 0x1e5   :  { %v2994_v49 = vor.u32 %v3944_v47, %v2993_v46  ;;  %v3315_v46 = vld [vmem:[#allocation2 + $0x290] sm:$0xf0] }
 0x1e6   :  { %1302 = vmatpush.bf16.msra.mxu2 %v3074_v52  ;;  %1382 = vmatpush.bf16.msrb.mxu0 %v3054_v24  ;;  %v3003_v52 = vld [vmem:[#allocation2 + $0x18] sm:$0xf0]  ;;  %v4030_v24 = vld [vmem:[#allocation2 + $0x2c4] sm:$0xf] }
 0x1e7   :  { %v3006_v19 = vor.u32 %v3943_v20, %v3003_v52  ;;  %v3954_v52 = vld [vmem:[#allocation2 + $0x64] sm:$0xf] }
 0x1e8   :  { %1315 = vmatpush.bf16.msra.mxu3 %v3202_v57  ;;  %1394 = vmatpush.bf16.msrb.mxu1 %v3198_v16  ;;  %v3122_v57 = vor.u32 %v3976_v50, %v3121_v48  ;;  %v4066_v16 = vld [vmem:[#allocation2 + $0x3e4] sm:$0xf]  ;;  %v3443_v50 = vld [vmem:[#allocation2 + $0x390] sm:$0xf0] }
 0x1ea   :  { %1303 = vmatpush.bf16.msra.mxu2 %v3058_v60  ;;  %v3970_v60 = vld [vmem:[#allocation2 + $0xe4] sm:$0xf] }
 0x1eb   :  { %v3110_v6 = vor.u32 %v3970_v60, %v3107_v2  ;;  %v4018_v2 = vld [vmem:[#allocation2 + $0x264] sm:$0xf] }
 0x1ec   :  { %1316 = vmatpush.bf16.msra.mxu3 %v3186_v5  ;;  %v3235_v5 = vld [vmem:[#allocation2 + $0x1f0] sm:$0xf0] }
 0x1ed   :  { %v3238_v8 = vor.u32 %v4002_v7, %v3235_v5  ;;  %v3299_v7 = vld [vmem:[#allocation2 + $0x270] sm:$0xf0] }
 0x1ee   :  { %1304 = vmatpush.bf16.msra.mxu2 %v3042_v22  ;;  %v3091_v22 = vld [vmem:[#allocation2 + $0xd0] sm:$0xf0] }
 0x1ef   :  { %v3094_v54 = vor.u32 %v3966_v21, %v3091_v22  ;;  %v3155_v22 = vld [vmem:[#allocation2 + $0x150] sm:$0xf0] }
 0x1f0   :  { %1317 = vmatpush.bf16.msra.mxu3 %v3170_v53  ;;  %v3494_v53 = vor.u32 %v4066_v16, %v3491_v0  ;;  %v3950_v16 = vld [vmem:[#allocation2 + $0x44] sm:$0xf] }
 0x1f1   :  { %v3982_v0 = vld [vmem:[#allocation2 + $0x144] sm:$0xf] }
 0x1f2   :  { %1305 = vmatpush.bf16.msra.mxu2 %v3026_v12  ;;  %v3478_v12 = vor.u32 %v4062_v31, %v3475_v32  ;;  %v3946_v31 = vld [vmem:[#allocation2 + $0x24] sm:$0xf]  ;;  %v3011_v32 = vld [vmem:[#allocation2 + $0x30] sm:$0xf0] }
 0x1f3   :  { %829 = vmatmul.bf16.vlgmr.msrb.gmra.mxu2 %v574_v4  ;;  %853 = vmatmul.bf16.vlgmr.msrb.gmra.mxu3 %v574_v4 }
 0x1f4   :  { %1318 = vmatpush.bf16.msra.mxu3 %v3154_v1 }
 0x1f6   :  { %1306 = vmatpush.bf16.msra.mxu2 %v3010_v28  ;;  %v4058_v28 = vld [vmem:[#allocation2 + $0x3a4] sm:$0xf] }
 0x1f7   :  { %v3462_v11 = vor.u32 %v4058_v28, %v3459_v10  ;;  %v3942_v10 = vld [vmem:[#allocation2 + $0x4] sm:$0xf] }
 0x1f8   :  { %1319 = vmatpush.bf16.msra.mxu3 %v3138_v44  ;;  %v3059_v44 = vld [vmem:[#allocation2 + $0x90] sm:$0xf0] }
 0x1f9   :  { %v3062_v18 = vor.u32 %v3958_v13, %v3059_v44  ;;  %v3974_v13 = vld [vmem:[#allocation2 + $0x104] sm:$0xf] }
 0x1fa   :  { %1307 = vmatpush.bf16.msra.mxu2 %v2994_v49  ;;  %v4054_v49 = vld [vmem:[#allocation2 + $0x384] sm:$0xf] }
 0x1fb   :  { %v3446_v20 = vor.u32 %v4054_v49, %v3443_v50 }
 0x1fc   :  { %1320 = vmatpush.bf16.msra.mxu3 %v3122_v57  ;;  %v3043_v57 = vld [vmem:[#allocation2 + $0x70] sm:$0xf0] }
 0x1fd   :  { %v3046_v60 = vor.u32 %v3954_v52, %v3043_v57  ;;  %v869_v52 = vld [vmem:[%s4991_s7] sm:$0x3] }
 0x1fe   :  { %1326 = vmatpush.bf16.msrb.mxu2 %v3110_v6  ;;  %v3302_v6 = vor.u32 %v4018_v2, %v3299_v7 }
 0x200   :  { %1339 = vmatpush.bf16.msrb.mxu3 %v3238_v8  ;;  %v4050_v8 = vld [vmem:[#allocation2 + $0x364] sm:$0xf] }
 0x201   :  { %v3430_v15 = vor.u32 %v4050_v8, %v3427_v9 }
 0x202   :  { %1327 = vmatpush.bf16.msrb.mxu2 %v3094_v54  ;;  %v3283_v54 = vld [vmem:[#allocation2 + $0x250] sm:$0xf0] }
 0x203   :  { %834 = vmatmul.bf16.gmra.mxu2 %v575_v27  ;;  %858 = vmatmul.bf16.gmra.mxu3 %v575_v27  ;;  %v3179_v27 = vld [vmem:[#allocation2 + $0x178] sm:$0xf0] }
 0x204   :  { %v3182_v29 = vor.u32 %v3987_v23, %v3179_v27  ;;  %v3219_v23 = vld [vmem:[#allocation2 + $0x1d0] sm:$0xf0] }
 0x205   :  { %v3222_v27 = vor.u32 %v3998_v55, %v3219_v23  ;;  %v3158_v55 = vor.u32 %v3982_v0, %v3155_v22 }
 0x206   :  { %1395 = vmatpush.bf16.msrb.mxu1 %v3182_v29  ;;  %v3347_v29 = vld [vmem:[#allocation2 + $0x2d0] sm:$0xf0] }
 0x207   :  { %v3350_v33 = vor.u32 %v4030_v24, %v3347_v29  ;;  %1340 = vmatpush.bf16.msrb.mxu3 %v3222_v27  ;;  %v4046_v24 = vld [vmem:[#allocation2 + $0x344] sm:$0xf]  ;;  %v3411_v27 = vld [vmem:[#allocation2 + $0x350] sm:$0xf0] }
 0x208   :  { %v3414_v29 = vor.u32 %v4046_v24, %v3411_v27 }
 0x20a   :  { %1396 = vmatpush.bf16.msrb.mxu1 %v3166_v39  ;;  %v4026_v39 = vld [vmem:[#allocation2 + $0x2a4] sm:$0xf] }
 0x20b   :  { %v3334_v51 = vor.u32 %v4026_v39, %v3331_v14 }
 0x20e   :  { %1397 = vmatpush.bf16.msrb.mxu1 %v3150_v26  ;;  %v4022_v26 = vld [vmem:[#allocation2 + $0x284] sm:$0xf] }
 0x20f   :  { %v3318_v48 = vor.u32 %v4022_v26, %v3315_v46 }
 0x212   :  { %1398 = vmatpush.bf16.msrb.mxu1 %v3134_v61  ;;  %v3171_v61 = vld [vmem:[#allocation2 + $0x170] sm:$0xf0] }
 0x213   :  { %839 = vmatmul.bf16.gmra.mxu2 %v576_v35  ;;  %863 = vmatmul.bf16.gmra.mxu3 %v576_v35  ;;  %v3951_v35 = vld [vmem:[#allocation2 + $0x4c] sm:$0xf] }
 0x214   :  { %v3038_v36 = vor.u32 %v3951_v35, %v3035_v38  ;;  %v3075_v35 = vld [vmem:[#allocation2 + $0xb0] sm:$0xf0]  ;;  %v3994_v38 = vld [vmem:[#allocation2 + $0x1a4] sm:$0xf] }
 0x215   :  { %v3078_v37 = vor.u32 %v3962_v34, %v3075_v35  ;;  %v3206_v40 = vor.u32 %v3994_v38, %v3203_v45  ;;  %v3014_v35 = vor.u32 %v3946_v31, %v3011_v32  ;;  %v3139_v38 = vld [vmem:[#allocation2 + $0x130] sm:$0xf0]  ;;  %v3113_v32 = vld [vmem:[#allocation2 + $0xe8] sm:$0xf] }
 0x216   :  { %1383 = vmatpush.bf16.msrb.mxu0 %v3038_v36  ;;  %1848 = vmatpush.bf16.msra.mxu1 %v3494_v53  ;;  %v4014_v53 = vld [vmem:[#allocation2 + $0x244] sm:$0xf]  ;;  %v3267_v45 = vld [vmem:[#allocation2 + $0x230] sm:$0xf0] }
 0x217   :  { %1328 = vmatpush.bf16.msrb.mxu2 %v3078_v37  ;;  %1341 = vmatpush.bf16.msrb.mxu3 %v3206_v40  ;;  %v3286_v23 = vor.u32 %v4014_v53, %v3283_v54  ;;  %v4010_v37 = vld [vmem:[#allocation2 + $0x224] sm:$0xf] }
 0x218   :  { %v3270_v14 = vor.u32 %v4010_v37, %v3267_v45  ;;  %v4042_v40 = vld [vmem:[#allocation2 + $0x324] sm:$0xf] }
 0x21a   :  { %1384 = vmatpush.bf16.msrb.mxu0 %v3022_v59  ;;  %1849 = vmatpush.bf16.msra.mxu1 %v3478_v12  ;;  %v3990_v59 = vld [vmem:[#allocation2 + $0x184] sm:$0xf] }
 0x21b   :  { %v3190_v47 = vor.u32 %v3990_v59, %v3187_v43  ;;  %1329 = vmatpush.bf16.msrb.mxu2 %v3062_v18  ;;  %v3123_v59 = vld [vmem:[#allocation2 + $0x110] sm:$0xf0]  ;;  %v4006_v18 = vld [vmem:[#allocation2 + $0x204] sm:$0xf] }
 0x21c   :  { %v3251_v43 = vld [vmem:[#allocation2 + $0x210] sm:$0xf0]  ;;  %v3126_v26 = vor.u32 %v3974_v13, %v3123_v59  ;;  %v3225_v59 = vld [vmem:[#allocation2 + $0x1c8] sm:$0xf] }
 0x21d   :  { %1342 = vmatpush.bf16.msrb.mxu3 %v3190_v47  ;;  %v3254_v46 = vor.u32 %v4006_v18, %v3251_v43  ;;  %v4038_v47 = vld [vmem:[#allocation2 + $0x304] sm:$0xf]  ;;  %v4001_v18 = vld [vmem:[#allocation2 + $0x1d4] sm:$0xf0] }
 0x21e   :  { %1385 = vmatpush.bf16.msrb.mxu0 %v3006_v19  ;;  %1850 = vmatpush.bf16.msra.mxu1 %v3462_v11  ;;  %v3986_v19 = vld [vmem:[#allocation2 + $0x164] sm:$0xf]  ;;  %v2995_v11 = vld [vmem:[#allocation2 + $0x10] sm:$0xf0] }
 0x21f   :  { %v3174_v5 = vor.u32 %v3986_v19, %v3171_v61  ;;  %1330 = vmatpush.bf16.msrb.mxu2 %v3046_v60  ;;  %v2998_v44 = vor.u32 %v3942_v10, %v2995_v11  ;;  %v4784_v60 = vperm.slane %v869_v52, 0  ;;  %v4786_v61 = vperm.slane %v869_v52, 1 }
 0x221   :  { %1343 = vmatpush.bf16.msrb.mxu3 %v3174_v5 }
 0x222   :  { %1835 = vmatpush.bf16.msra.mxu0 %v3366_v17  ;;  %1851 = vmatpush.bf16.msra.mxu1 %v3446_v20  ;;  %v3027_v17 = vld [vmem:[#allocation2 + $0x50] sm:$0xf0] }
 0x223   :  { %v3030_v21 = vor.u32 %v3950_v16, %v3027_v17 }
 0x225   :  { %1331 = vmatpush.bf16.msrb.mxu2 %v3030_v21  ;;  %1344 = vmatpush.bf16.msrb.mxu3 %v3158_v55 }
 0x226   :  { %1836 = vmatpush.bf16.msra.mxu0 %v3350_v33  ;;  %1852 = vmatpush.bf16.msra.mxu1 %v3430_v15  ;;  %v3978_v33 = vld [vmem:[#allocation2 + $0x124] sm:$0xf] }
 0x227   :  { %v3142_v39 = vor.u32 %v3978_v33, %v3139_v38  ;;  %v4035_v38 = vld [vmem:[#allocation2 + $0x2ec] sm:$0xf] }
 0x229   :  { %1332 = vmatpush.bf16.msrb.mxu2 %v3014_v35  ;;  %1345 = vmatpush.bf16.msrb.mxu3 %v3142_v39  ;;  %v4005_v35 = vld [vmem:[#allocation2 + $0x1f4] sm:$0xf0] }
 0x22a   :  { %1837 = vmatpush.bf16.msra.mxu0 %v3334_v51  ;;  %v3395_v51 = vld [vmem:[#allocation2 + $0x330] sm:$0xf0]  ;;  %1853 = vmatpush.bf16.msra.mxu1 %v3414_v29 }
 0x22b   :  { %v3398_v28 = vor.u32 %v4042_v40, %v3395_v51  ;;  %v3499_v40 = vld [vmem:[#allocation2 + $0x3f8] sm:$0xf0] }
 0x22d   :  { %1333 = vmatpush.bf16.msrb.mxu2 %v2998_v44  ;;  %1346 = vmatpush.bf16.msrb.mxu3 %v3126_v26  ;;  %v3969_v44 = vld [vmem:[#allocation2 + $0xd4] sm:$0xf0] }
 0x22e   :  { %1838 = vmatpush.bf16.msra.mxu0 %v3318_v48  ;;  %v3379_v48 = vld [vmem:[#allocation2 + $0x310] sm:$0xf0]  ;;  %1854 = vmatpush.bf16.msra.mxu1 %v3398_v28 }
 0x22f   :  { %v3382_v49 = vor.u32 %v4038_v47, %v3379_v48  ;;  %v3355_v47 = vld [vmem:[#allocation2 + $0x2d8] sm:$0xf0] }
 0x232   :  { %1839 = vmatpush.bf16.msra.mxu0 %v3302_v6  ;;  %1855 = vmatpush.bf16.msra.mxu1 %v3382_v49 }
 0x236   :  { %1840 = vmatpush.bf16.msra.mxu0 %v3286_v23 }
 0x23a   :  { %1841 = vmatpush.bf16.msra.mxu0 %v3270_v14  ;;  %v3371_v14 = vld [vmem:[#allocation2 + $0x2f8] sm:$0xf0] }
 0x23b   :  { %v3374_v43 = vor.u32 %v4035_v38, %v3371_v14 }
 0x23e   :  { %1842 = vmatpush.bf16.msra.mxu0 %v3254_v46  ;;  %v4031_v46 = vld [vmem:[#allocation2 + $0x2cc] sm:$0xf] }
 0x246   :  { %v4757_v41 = vpop.f32.mrf.mxu2  ;;  %v4759_v42 = vpop.f32.mrf.mxu3 }
 0x24e   :  { %v4761_v3 = vpop.f32.mrf.mxu2  ;;  %v4763_v4 = vpop.f32.mrf.mxu3 }
 0x256   :  { %v4765_v62 = vpop.f32.mrf.mxu2  ;;  %v4767_v63 = vpop.f32.mrf.mxu3 }
 0x25e   :  { %v4769_v25 = vpop.f32.mrf.mxu2  ;;  %v4771_v56 = vpop.f32.mrf.mxu3 }
 0x266   :  { %v4773_v1 = vpop.f32.mrf.mxu2  ;;  %v4775_v36 = vpop.f32.mrf.mxu3 }
 0x26e   :  { %v4777_v30 = vpop.f32.mrf.mxu2  ;;  %v4779_v58 = vpop.f32.mrf.mxu3 }
 0x276   :  { %v830_v12 = vpop.f32.mrf.mxu2  ;;  %v854_v34 = vpop.f32.mrf.mxu3 }
 0x277   :  { %v831_v8 = vadd.f32 %v830_v12, %v4757_v41  ;;  %v855_v9 = vadd.f32 %v854_v34, %v4759_v42  ;;  %v3973_v12 = vld [vmem:[#allocation2 + $0xf4] sm:$0xf0]  ;;  %v3241_v34 = vld [vmem:[#allocation2 + $0x1e8] sm:$0xf] }
 0x278   :  { %v3242_v10 = vor.u32 %v4005_v35, %v3241_v34  ;;  %v4023_v34 = vld [vmem:[#allocation2 + $0x28c] sm:$0xf] }
 0x279   :  { %v875_v17 = vadd.f32 %v4784_v60, %v831_v8  ;;  %v876_v0 = vadd.f32 %v4786_v61, %v855_v9  ;;  %v3226_v8 = vor.u32 %v4001_v18, %v3225_v59  ;;  %v3081_v9 = vld [vmem:[#allocation2 + $0xa8] sm:$0xf]  ;;  %v3307_v18 = vld [vmem:[#allocation2 + $0x278] sm:$0xf0] }
 0x27b   :  { %v887_v53 = vmax.f32 %v875_v17, 0.0  ;;  %v888_v54 = vmax.f32 %v876_v0, 0.0  ;;  %v3965_v17 = vld [vmem:[#allocation2 + $0xb4] sm:$0xf0]  ;;  %v3209_v0 = vld [vmem:[#allocation2 + $0x1a8] sm:$0xf] }
 0x27e   :  { %v832_v50 = vpop.f32.mrf.mxu2  ;;  %v856_v20 = vpop.f32.mrf.mxu3 }
 0x27f   :  { %v833_v24 = vadd.f32 %v832_v50, %v4761_v3  ;;  %v857_v27 = vadd.f32 %v856_v20, %v4763_v4  ;;  %v4067_v4 = vld [vmem:[#allocation2 + $0x3ec] sm:$0xf]  ;;  %v3483_v20 = vld [vmem:[#allocation2 + $0x3d8] sm:$0xf0] }
 0x280   :  { %v3502_v26 = vor.u32 %v4067_v4, %v3499_v40  ;;  %v4063_v50 = vld [vmem:[#allocation2 + $0x3cc] sm:$0xf]  ;;  %v3049_v4 = vld [vmem:[#allocation2 + $0x68] sm:$0xf]  ;;  %v3957_v40 = vld [vmem:[#allocation2 + $0x74] sm:$0xf0] }
 0x281   :  { %v877_v51 = vadd.f32 %v4784_v60, %v833_v24  ;;  %v878_v28 = vadd.f32 %v4786_v61, %v857_v27  ;;  %v3467_v24 = vld [vmem:[#allocation2 + $0x3b8] sm:$0xf0]  ;;  %v3065_v27 = vld [vmem:[#allocation2 + $0x88] sm:$0xf] }
 0x283   :  { %v889_v52 = vmax.f32 %v877_v51, 0.0  ;;  %v3177_v51 = vld [vmem:[#allocation2 + $0x168] sm:$0xf] }
 0x286   :  { %v835_v57 = vpop.f32.mrf.mxu2  ;;  %v859_v19 = vpop.f32.mrf.mxu3 }
 0x287   :  { %v836_v2 = vadd.f32 %v835_v57, %v4765_v62  ;;  %v860_v7 = vadd.f32 %v859_v19, %v4767_v63  ;;  %v890_v57 = vmax.f32 %v878_v28, 0.0  ;;  %v3989_v28 = vld [vmem:[#allocation2 + $0x174] sm:$0xf0] }
 0x289   :  { %v4791_v5 = vadd.f32 %v4784_v60, %v836_v2  ;;  %v4794_v6 = vadd.f32 %v4786_v61, %v860_v7 }
 0x28e   :  { %v837_v15 = vpop.f32.mrf.mxu2  ;;  %v861_v16 = vpop.f32.mrf.mxu3 }
 0x28f   :  { %v838_v62 = vadd.f32 %v837_v15, %v4769_v25  ;;  %v862_v63 = vadd.f32 %v861_v16, %v4771_v56 }
 0x291   :  { %v881_v21 = vadd.f32 %v4784_v60, %v838_v62  ;;  %v882_v22 = vadd.f32 %v4786_v61, %v862_v63  ;;  %v3997_v62 = vld [vmem:[#allocation2 + $0x1b4] sm:$0xf0]  ;;  %v3358_v63 = vor.u32 %v4031_v46, %v3355_v47  ;;  %v3050_v46 = vor.u32 %v3957_v40, %v3049_v4 }
 0x292   :  { %v3178_v47 = vor.u32 %v3989_v28, %v3177_v51  ;;  %v3345_v28 = vld [vmem:[#allocation2 + $0x2c0] sm:$0xf] }
 0x293   :  { %v893_v55 = vmax.f32 %v881_v21, 0.0  ;;  %v894_v41 = vmax.f32 %v882_v22, 0.0  ;;  %v3486_v21 = vor.u32 %v4063_v50, %v3483_v20  ;;  %v4027_v22 = vld [vmem:[#allocation2 + $0x2ac] sm:$0xf]  ;;  %v3161_v50 = vld [vmem:[#allocation2 + $0x148] sm:$0xf] }
 0x294   :  { %v3985_v20 = vld [vmem:[#allocation2 + $0x154] sm:$0xf0] }
 0x295   :  { %v899_v23 = vmax.f32 %v887_v53, %v893_v55  ;;  %v900_v42 = vmax.f32 %v888_v54, %v894_v41 }
 0x296   :  { %v840_v29 = vpop.f32.mrf.mxu2  ;;  %v864_v31 = vpop.f32.mrf.mxu3 }
 0x297   :  { %v905_v25 = vpack.c.bf16 %v900_v42, %v899_v23  ;;  %v841_v56 = vadd.f32 %v840_v29, %v4773_v1  ;;  %v865_v33 = vadd.f32 %v864_v31, %v4775_v36  ;;  %v3114_v1 = vor.u32 %v3973_v12, %v3113_v32  ;;  %v3097_v36 = vld [vmem:[#allocation2 + $0xc8] sm:$0xf]  ;;  %v3339_v23 = vld [vmem:[#allocation2 + $0x2b8] sm:$0xf0]  ;;  %v4059_v42 = vld [vmem:[#allocation2 + $0x3ac] sm:$0xf] }
 0x298   :  { %v3098_v7 = vor.u32 %v3969_v44, %v3097_v36  ;;  %v3961_v29 = vld [vmem:[#allocation2 + $0x94] sm:$0xf0]  ;;  %v3193_v31 = vld [vmem:[#allocation2 + $0x188] sm:$0xf]  ;;  %v891_v32 = vmax.f32 %v4791_v5, 0.0 }
 0x299   :  { %v883_v37 = vadd.f32 %v4784_v60, %v841_v56  ;;  %v884_v45 = vadd.f32 %v4786_v61, %v865_v33  ;;  %v974_v39 = vunpack.c.l.b16 %v905_v25  ;;  %v975_v3 = vunpack.c.h.b16 %v905_v25  ;;  %v3993_v12 = vld [vmem:[#allocation2 + $0x194] sm:$0xf0]  ;;  %v4019_v36 = vld [vmem:[#allocation2 + $0x26c] sm:$0xf] }
 0x29a   :  { %v892_v25 = vmax.f32 %v4794_v6, 0.0  ;;  %v3066_v14 = vor.u32 %v3961_v29, %v3065_v27  ;;  %v3194_v5 = vor.u32 %v3993_v12, %v3193_v31  ;;  %v3129_v27 = vld [vmem:[#allocation2 + $0x108] sm:$0xf]  ;;  %v3977_v29 = vld [vmem:[#allocation2 + $0x114] sm:$0xf0] }
 0x29b   :  { %v4812_v11 = vpack.c.b16 %v974_v39, %v974_v39  ;;  %v4814_v13 = vpack.c.b16 %v975_v3, %v975_v3  ;;  %v895_v48 = vmax.f32 %v883_v37, 0.0  ;;  %v896_v49 = vmax.f32 %v884_v45, 0.0  ;;  %v3323_v45 = vld [vmem:[#allocation2 + $0x298] sm:$0xf0]  ;;  %v4055_v39 = vld [vmem:[#allocation2 + $0x38c] sm:$0xf] }
 0x29c   :  { %v3451_v3 = vld [vmem:[#allocation2 + $0x398] sm:$0xf0]  ;;  %v4007_v31 = vld [vmem:[#allocation2 + $0x20c] sm:$0xf]  ;;  %v4036_v12 = vld [vmem:[#allocation2 + $0x2ec] sm:$0xf0] }
 0x29d   :  { %1308 = vmatmul.bf16.vlgmr.msra.gmra.mxu2 %v4812_v11  ;;  %1321 = vmatmul.bf16.vlgmr.msra.gmra.mxu3 %v4814_v13  ;;  %v901_v53 = vmax.f32 %v889_v52, %v895_v48  ;;  %v902_v54 = vmax.f32 %v890_v57, %v896_v49  ;;  %v3033_v48 = vld [vmem:[#allocation2 + $0x48] sm:$0xf]  ;;  %v3953_v49 = vld [vmem:[#allocation2 + $0x54] sm:$0xf0]  ;;  %v3310_v52 = vor.u32 %v4019_v36, %v3307_v18  ;;  %v4094_v18 = vld [vmem:[#allocation2 + $0x4c4] sm:$0xf] }
 0x29e   :  { %1352 = vmatpush.bf16.msra.mxu2 %v3114_v1  ;;  %1365 = vmatpush.bf16.msra.mxu3 %v3242_v10  ;;  %v842_v19 = vpop.f32.mrf.mxu2  ;;  %v866_v2 = vpop.f32.mrf.mxu3  ;;  %v3326_v1 = vor.u32 %v4023_v34, %v3323_v45  ;;  %v3454_v10 = vor.u32 %v4055_v39, %v3451_v3  ;;  %v4039_v34 = vld [vmem:[#allocation2 + $0x30c] sm:$0xf]  ;;  %v3130_v45 = vor.u32 %v3977_v29, %v3129_v27  ;;  %v3619_v39 = vld [vmem:[#allocation2 + $0x4f0] sm:$0xf0]  ;;  %v4130_v3 = vld [vmem:[#allocation2 + $0x5e4] sm:$0xf] }
 0x29f   :  { %1386 = vmatmul.bf16.vlgmr.msrb.gmra.mxu0 %v4812_v11  ;;  %1399 = vmatmul.bf16.vlgmr.msrb.gmra.mxu1 %v4814_v13  ;;  %v843_v15 = vadd.f32 %v842_v19, %v4777_v30  ;;  %v867_v16 = vadd.f32 %v866_v2, %v4779_v58  ;;  %v3082_v30 = vor.u32 %v3965_v17, %v3081_v9  ;;  %v4015_v19 = vld [vmem:[#allocation2 + $0x24c] sm:$0xf]  ;;  %v3425_v29 = vld [vmem:[#allocation2 + $0x360] sm:$0xf] }
 0x2a0   :  { %1887 = vmatpush.bf16.msrb.mxu0 %v3374_v43  ;;  %1900 = vmatpush.bf16.msrb.mxu1 %v3502_v26  ;;  %v3210_v58 = vor.u32 %v3997_v62, %v3209_v0  ;;  %v906_v35 = vpack.c.bf16 %v902_v54, %v901_v53  ;;  %v4051_v43 = vld [vmem:[#allocation2 + $0x36c] sm:$0xf]  ;;  %v3435_v26 = vld [vmem:[#allocation2 + $0x378] sm:$0xf0]  ;;  %v3162_v17 = vor.u32 %v3985_v20, %v3161_v50  ;;  %v3017_v0 = vld [vmem:[#allocation2 + $0x28] sm:$0xf] }
 0x2a1   :  { %v885_v55 = vadd.f32 %v4784_v60, %v843_v15  ;;  %v886_v41 = vadd.f32 %v4786_v61, %v867_v16  ;;  %v3342_v60 = vor.u32 %v4027_v22, %v3339_v23  ;;  %v3470_v61 = vor.u32 %v4059_v42, %v3467_v24  ;;  %v4047_v9 = vld [vmem:[#allocation2 + $0x34c] sm:$0xf]  ;;  %v3419_v15 = vld [vmem:[#allocation2 + $0x358] sm:$0xf0]  ;;  %v3949_v62 = vld [vmem:[#allocation2 + $0x34] sm:$0xf0] }
 0x2a2   :  { %1353 = vmatpush.bf16.msra.mxu2 %v3098_v7  ;;  %1366 = vmatpush.bf16.msra.mxu3 %v3226_v8  ;;  %v1483_v44 = vunpack.c.l.b16 %v906_v35  ;;  %v1484_v59 = vunpack.c.h.b16 %v906_v35  ;;  %v3438_v57 = vor.u32 %v4051_v43, %v3435_v26  ;;  %v3291_v8 = vld [vmem:[#allocation2 + $0x258] sm:$0xf0]  ;;  %v3034_v16 = vor.u32 %v3953_v49, %v3033_v48  ;;  %v4011_v54 = vld [vmem:[#allocation2 + $0x22c] sm:$0xf]  ;;  %v3001_v42 = vld [vmem:[#allocation2 + $0x8] sm:$0xf] }
 0x2a3   :  { %v897_v56 = vmax.f32 %v885_v55, 0.0  ;;  %v898_v33 = vmax.f32 %v886_v41, 0.0  ;;  %v3294_v22 = vor.u32 %v4015_v19, %v3291_v8  ;;  %v3422_v53 = vor.u32 %v4047_v9, %v3419_v15  ;;  %v3275_v55 = vld [vmem:[#allocation2 + $0x238] sm:$0xf0]  ;;  %v4043_v41 = vld [vmem:[#allocation2 + $0x32c] sm:$0xf] }
 0x2a4   :  { %1888 = vmatpush.bf16.msrb.mxu0 %v3358_v63  ;;  %1901 = vmatpush.bf16.msrb.mxu1 %v3486_v21  ;;  %v4828_v2 = vpack.c.b16 %v1483_v44, %v1483_v44  ;;  %v4830_v7 = vpack.c.b16 %v1484_v59, %v1484_v59  ;;  %v3145_v63 = vld [vmem:[#allocation2 + $0x128] sm:$0xf]  ;;  %v3981_v21 = vld [vmem:[#allocation2 + $0x134] sm:$0xf0]  ;;  %v3403_v23 = vld [vmem:[#allocation2 + $0x338] sm:$0xf0]  ;;  %v3018_v24 = vor.u32 %v3949_v62, %v3017_v0 }
 0x2a5   :  { %v903_v38 = vmax.f32 %v891_v32, %v897_v56  ;;  %v904_v37 = vmax.f32 %v892_v25, %v898_v33  ;;  %v3259_v32 = vld [vmem:[#allocation2 + $0x218] sm:$0xf0]  ;;  %v3361_v25 = vld [vmem:[#allocation2 + $0x2e0] sm:$0xf]  ;;  %v3278_v56 = vor.u32 %v4011_v54, %v3275_v55  ;;  %v3406_v33 = vor.u32 %v4043_v41, %v3403_v23  ;;  %v4064_v59 = vld [vmem:[#allocation2 + $0x3cc] sm:$0xf0] }
 0x2a6   :  { %1354 = vmatpush.bf16.msra.mxu2 %v3082_v30  ;;  %1367 = vmatpush.bf16.msra.mxu3 %v3210_v58  ;;  %v3146_v30 = vor.u32 %v3981_v21, %v3145_v63  ;;  %v3945_v58 = vld [vmem:[#allocation2 + $0x14] sm:$0xf0]  ;;  %v3387_v35 = vld [vmem:[#allocation2 + $0x318] sm:$0xf0]  ;;  %v3262_v40 = vor.u32 %v4007_v31, %v3259_v32  ;;  %v3473_v44 = vld [vmem:[#allocation2 + $0x3c0] sm:$0xf] }
 0x2a7   :  { %v4826_v6 = vpack.c.bf16 %v904_v37, %v903_v38  ;;  %v4098_v38 = vld [vmem:[#allocation2 + $0x4e4] sm:$0xf]  ;;  %v3002_v37 = vor.u32 %v3945_v58, %v3001_v42  ;;  %v3390_v51 = vor.u32 %v4039_v34, %v3387_v35  ;;  %v3603_v43 = vld [vmem:[#allocation2 + $0x4d0] sm:$0xf0]  ;;  %v3474_v48 = vor.u32 %v4064_v59, %v3473_v44  ;;  %v3329_v49 = vld [vmem:[#allocation2 + $0x2a0] sm:$0xf] }
 0x2a8   :  { %1889 = vmatpush.bf16.msrb.mxu0 %v3342_v60  ;;  %1902 = vmatpush.bf16.msrb.mxu1 %v3470_v61  ;;  %v3489_v60 = vld [vmem:[#allocation2 + $0x3e0] sm:$0xf]  ;;  %v4068_v61 = vld [vmem:[#allocation2 + $0x3ec] sm:$0xf0]  ;;  %v4126_v26 = vld [vmem:[#allocation2 + $0x5c4] sm:$0xf]  ;;  %v3606_v20 = vor.u32 %v4094_v18, %v3603_v43 }
 0x2a9   :  { %v3490_v4 = vor.u32 %v4068_v61, %v3489_v60  ;;  %v4028_v50 = vld [vmem:[#allocation2 + $0x2ac] sm:$0xf0]  ;;  %v4090_v8 = vld [vmem:[#allocation2 + $0x4a4] sm:$0xf]  ;;  %v3587_v9 = vld [vmem:[#allocation2 + $0x4b0] sm:$0xf0] }
 0x2aa   :  { %1355 = vmatpush.bf16.msra.mxu2 %v3066_v14  ;;  %1368 = vmatpush.bf16.msra.mxu3 %v3194_v5  ;;  %v3747_v14 = vld [vmem:[#allocation2 + $0x5f0] sm:$0xf0]  ;;  %v3362_v5 = vor.u32 %v4036_v12, %v3361_v25  ;;  %v4060_v19 = vld [vmem:[#allocation2 + $0x3ac] sm:$0xf0]  ;;  %v4122_v15 = vld [vmem:[#allocation2 + $0x5a4] sm:$0xf]  ;;  %v3590_v21 = vor.u32 %v4090_v8, %v3587_v9 }
 0x2ab   :  { %v3750_v36 = vor.u32 %v4130_v3, %v3747_v14  ;;  %v3313_v62 = vld [vmem:[#allocation2 + $0x280] sm:$0xf]  ;;  %v4024_v63 = vld [vmem:[#allocation2 + $0x28c] sm:$0xf0]  ;;  %v3571_v54 = vld [vmem:[#allocation2 + $0x490] sm:$0xf0] }
 0x2ac   :  { %1890 = vmatpush.bf16.msrb.mxu0 %v3326_v1  ;;  %1903 = vmatpush.bf16.msrb.mxu1 %v3454_v10  ;;  %v4032_v1 = vld [vmem:[#allocation2 + $0x2cc] sm:$0xf0]  ;;  %v3622_v10 = vor.u32 %v4098_v38, %v3619_v39  ;;  %v4118_v55 = vld [vmem:[#allocation2 + $0x584] sm:$0xf]  ;;  %v3699_v41 = vld [vmem:[#allocation2 + $0x590] sm:$0xf0]  ;;  %v3314_v23 = vor.u32 %v4024_v63, %v3313_v62 }
 0x2ad   :  { %1334 = vmatmul.bf16.vlgmr.msrb.gmra.mxu2 %v4812_v11  ;;  %1347 = vmatmul.bf16.vlgmr.msrb.gmra.mxu3 %v4814_v13  ;;  %v3702_v27 = vor.u32 %v4118_v55, %v3699_v41  ;;  %v4052_v31 = vld [vmem:[#allocation2 + $0x36c] sm:$0xf0]  ;;  %v4082_v32 = vld [vmem:[#allocation2 + $0x464] sm:$0xf]  ;;  %v3555_v25 = vld [vmem:[#allocation2 + $0x470] sm:$0xf0]  ;;  %v1983_v41 = vunpack.c.l.b16 %v4826_v6 }
 0x2ae   :  { %1356 = vmatpush.bf16.msra.mxu2 %v3050_v46  ;;  %1369 = vmatpush.bf16.msra.mxu3 %v3178_v47  ;;  %v3731_v46 = vld [vmem:[#allocation2 + $0x5d0] sm:$0xf0]  ;;  %v3346_v47 = vor.u32 %v4032_v1, %v3345_v28  ;;  %v3426_v60 = vor.u32 %v4052_v31, %v3425_v29  ;;  %v3281_v61 = vld [vmem:[#allocation2 + $0x240] sm:$0xf]  ;;  %v4016_v34 = vld [vmem:[#allocation2 + $0x24c] sm:$0xf0]  ;;  %v3558_v35 = vor.u32 %v4082_v32, %v3555_v25 }
 0x2af   :  { %1843 = vmatmul.bf16.vlgmr.msra.gmra.mxu0 %v4828_v2  ;;  %1856 = vmatmul.bf16.vlgmr.msra.gmra.mxu1 %v4830_v7  ;;  %v4078_v39 = vld [vmem:[#allocation2 + $0x444] sm:$0xf]  ;;  %v3539_v3 = vld [vmem:[#allocation2 + $0x450] sm:$0xf0]  ;;  %v4012_v28 = vld [vmem:[#allocation2 + $0x22c] sm:$0xf0] }
 0x2b0   :  { %1891 = vmatpush.bf16.msrb.mxu0 %v3310_v52  ;;  %1904 = vmatpush.bf16.msrb.mxu1 %v3438_v57  ;;  %v3734_v52 = vor.u32 %v4126_v26, %v3731_v46  ;;  %v3457_v57 = vld [vmem:[#allocation2 + $0x3a0] sm:$0xf]  ;;  %v4110_v14 = vld [vmem:[#allocation2 + $0x544] sm:$0xf]  ;;  %v3542_v1 = vor.u32 %v4078_v39, %v3539_v3  ;;  %v4044_v44 = vld [vmem:[#allocation2 + $0x32c] sm:$0xf0] }
 0x2b1   :  { %v3458_v0 = vor.u32 %v4060_v19, %v3457_v57  ;;  %v4074_v59 = vld [vmem:[#allocation2 + $0x424] sm:$0xf]  ;;  %v3523_v18 = vld [vmem:[#allocation2 + $0x430] sm:$0xf0]  ;;  %v3249_v46 = vld [vmem:[#allocation2 + $0x200] sm:$0xf] }
 0x2b2   :  { %1357 = vmatpush.bf16.msra.mxu2 %v3034_v16  ;;  %1370 = vmatpush.bf16.msra.mxu3 %v3162_v17  ;;  %v3715_v16 = vld [vmem:[#allocation2 + $0x5b0] sm:$0xf0]  ;;  %v3330_v17 = vor.u32 %v4028_v50, %v3329_v49  ;;  %v4106_v43 = vld [vmem:[#allocation2 + $0x524] sm:$0xf]  ;;  %v4008_v49 = vld [vmem:[#allocation2 + $0x20c] sm:$0xf0] }
 0x2b3   :  { %v3651_v26 = vld [vmem:[#allocation2 + $0x530] sm:$0xf0]  ;;  %v3377_v50 = vld [vmem:[#allocation2 + $0x300] sm:$0xf]  ;;  %v4070_v19 = vld [vmem:[#allocation2 + $0x404] sm:$0xf] }
 0x2b4   :  { %1892 = vmatpush.bf16.msrb.mxu0 %v3294_v22  ;;  %1905 = vmatpush.bf16.msrb.mxu1 %v3422_v53  ;;  %v3718_v22 = vor.u32 %v4122_v15, %v3715_v16  ;;  %v4056_v53 = vld [vmem:[#allocation2 + $0x38c] sm:$0xf0]  ;;  %v3654_v57 = vor.u32 %v4106_v43, %v3651_v26  ;;  %v3507_v8 = vld [vmem:[#allocation2 + $0x410] sm:$0xf0]  ;;  %v4102_v9 = vld [vmem:[#allocation2 + $0x504] sm:$0xf] }
 0x2b5   :  { %v3635_v15 = vld [vmem:[#allocation2 + $0x510] sm:$0xf0]  ;;  %v3369_v16 = vld [vmem:[#allocation2 + $0x2e8] sm:$0xf]  ;;  %v4069_v62 = vld [vmem:[#allocation2 + $0x3f4] sm:$0xf0] }
 0x2b6   :  { %1358 = vmatpush.bf16.msra.mxu2 %v3018_v24  ;;  %1371 = vmatpush.bf16.msra.mxu3 %v3146_v30  ;;  %v3297_v24 = vld [vmem:[#allocation2 + $0x260] sm:$0xf]  ;;  %v4020_v30 = vld [vmem:[#allocation2 + $0x26c] sm:$0xf0]  ;;  %v4099_v63 = vld [vmem:[#allocation2 + $0x4ec] sm:$0xf]  ;;  %v3638_v55 = vor.u32 %v4102_v9, %v3635_v15 }
 0x2b7   :  { %v3298_v12 = vor.u32 %v4020_v30, %v3297_v24  ;;  %v3353_v24 = vld [vmem:[#allocation2 + $0x2c8] sm:$0xf]  ;;  %v4033_v30 = vld [vmem:[#allocation2 + $0x2d4] sm:$0xf0]  ;;  %v4095_v25 = vld [vmem:[#allocation2 + $0x4cc] sm:$0xf] }
 0x2b8   :  { %1893 = vmatpush.bf16.msrb.mxu0 %v3278_v56  ;;  %1906 = vmatpush.bf16.msrb.mxu1 %v3406_v33  ;;  %v4114_v56 = vld [vmem:[#allocation2 + $0x564] sm:$0xf]  ;;  %v3683_v33 = vld [vmem:[#allocation2 + $0x570] sm:$0xf0]  ;;  %v3481_v31 = vld [vmem:[#allocation2 + $0x3c8] sm:$0xf] }
 0x2b9   :  { %v3686_v38 = vor.u32 %v4114_v56, %v3683_v33  ;;  %v4065_v32 = vld [vmem:[#allocation2 + $0x3d4] sm:$0xf0]  ;;  %v3611_v56 = vld [vmem:[#allocation2 + $0x4d8] sm:$0xf0]  ;;  %v4127_v33 = vld [vmem:[#allocation2 + $0x5cc] sm:$0xf] }
 0x2ba   :  { %1359 = vmatpush.bf16.msra.mxu2 %v3002_v37  ;;  %1372 = vmatpush.bf16.msra.mxu3 %v3130_v45  ;;  %v3409_v37 = vld [vmem:[#allocation2 + $0x340] sm:$0xf]  ;;  %v4048_v45 = vld [vmem:[#allocation2 + $0x34c] sm:$0xf0]  ;;  %v3465_v39 = vld [vmem:[#allocation2 + $0x3a8] sm:$0xf] }
 0x2bb   :  { %v4061_v3 = vld [vmem:[#allocation2 + $0x3b4] sm:$0xf0]  ;;  %v4087_v43 = vld [vmem:[#allocation2 + $0x48c] sm:$0xf]  ;;  %v3579_v26 = vld [vmem:[#allocation2 + $0x498] sm:$0xf0] }
 0x2bc   :  { %1894 = vmatpush.bf16.msrb.mxu0 %v3262_v40  ;;  %1907 = vmatpush.bf16.msrb.mxu1 %v3390_v51  ;;  %v3410_v40 = vor.u32 %v4048_v45, %v3409_v37  ;;  %v3265_v51 = vld [vmem:[#allocation2 + $0x220] sm:$0xf]  ;;  %v3614_v37 = vor.u32 %v4095_v25, %v3611_v56  ;;  %v4083_v9 = vld [vmem:[#allocation2 + $0x46c] sm:$0xf]  ;;  %v3563_v15 = vld [vmem:[#allocation2 + $0x478] sm:$0xf0] }
 0x2bd   :  { %1360 = vmatmul.bf16.vlgmr.msra.gmra.mxu2 %v4812_v11  ;;  %1373 = vmatmul.bf16.vlgmr.msra.gmra.mxu3 %v4814_v13  ;;  %v3441_v11 = vld [vmem:[#allocation2 + $0x380] sm:$0xf]  ;;  %v4086_v13 = vld [vmem:[#allocation2 + $0x484] sm:$0xf]  ;;  %v4075_v25 = vld [vmem:[#allocation2 + $0x42c] sm:$0xf] }
 0x2be   :  { %1809 = vmatpush.bf16.msrb.mxu2 %v3362_v5  ;;  %1822 = vmatpush.bf16.msrb.mxu3 %v3490_v4  ;;  %v3442_v42 = vor.u32 %v4056_v53, %v3441_v11  ;;  %v3574_v58 = vor.u32 %v4086_v13, %v3571_v54  ;;  %v3667_v5 = vld [vmem:[#allocation2 + $0x550] sm:$0xf0]  ;;  %v3282_v4 = vor.u32 %v4016_v34, %v3281_v61  ;;  %v3627_v11 = vld [vmem:[#allocation2 + $0x4f8] sm:$0xf0]  ;;  %v4131_v53 = vld [vmem:[#allocation2 + $0x5ec] sm:$0xf] }
 0x2bf   :  { %1895 = vmatmul.bf16.vlgmr.msrb.gmra.mxu0 %v4828_v2  ;;  %1908 = vmatmul.bf16.vlgmr.msrb.gmra.mxu1 %v4830_v7  ;;  %v3755_v13 = vld [vmem:[#allocation2 + $0x5f8] sm:$0xf0]  ;;  %v3510_v54 = vor.u32 %v4070_v19, %v3507_v8  ;;  %v3354_v61 = vor.u32 %v4033_v30, %v3353_v24  ;;  %v3482_v34 = vor.u32 %v4065_v32, %v3481_v31  ;;  %v3433_v19 = vld [vmem:[#allocation2 + $0x368] sm:$0xf]  ;;  %v4053_v8 = vld [vmem:[#allocation2 + $0x374] sm:$0xf0] }
 0x2c0   :  { %2335 = vmatpush.bf16.msra.mxu0 %v3622_v10  ;;  %2348 = vmatpush.bf16.msra.mxu1 %v3750_v36  ;;  %v3670_v10 = vor.u32 %v4110_v14, %v3667_v5  ;;  %v3393_v36 = vld [vmem:[#allocation2 + $0x320] sm:$0xf]  ;;  %v3758_v29 = vor.u32 %v4131_v53, %v3755_v13  ;;  %v4091_v14 = vld [vmem:[#allocation2 + $0x4ac] sm:$0xf]  ;;  %v3595_v5 = vld [vmem:[#allocation2 + $0x4b8] sm:$0xf0] }
 0x2c1   :  { %v3417_v53 = vld [vmem:[#allocation2 + $0x348] sm:$0xf]  ;;  %v4049_v13 = vld [vmem:[#allocation2 + $0x354] sm:$0xf0]  ;;  %v3531_v56 = vld [vmem:[#allocation2 + $0x438] sm:$0xf0] }
 0x2c2   :  { %1810 = vmatpush.bf16.msrb.mxu2 %v3346_v47  ;;  %1823 = vmatpush.bf16.msrb.mxu3 %v3474_v48  ;;  %v3266_v47 = vor.u32 %v4012_v28, %v3265_v51  ;;  %v3394_v48 = vor.u32 %v4044_v44, %v3393_v36  ;;  %v3466_v28 = vor.u32 %v4061_v3, %v3465_v39  ;;  %v3273_v30 = vld [vmem:[#allocation2 + $0x228] sm:$0xf]  ;;  %v4045_v32 = vld [vmem:[#allocation2 + $0x334] sm:$0xf0] }
 0x2c3   :  { %v3598_v36 = vor.u32 %v4091_v14, %v3595_v5  ;;  %v3418_v24 = vor.u32 %v4049_v13, %v3417_v53  ;;  %v3401_v31 = vld [vmem:[#allocation2 + $0x328] sm:$0xf]  ;;  %v4041_v3 = vld [vmem:[#allocation2 + $0x314] sm:$0xf0]  ;;  %v4071_v14 = vld [vmem:[#allocation2 + $0x40c] sm:$0xf] }
 0x2c4   :  { %2336 = vmatpush.bf16.msra.mxu0 %v3606_v20  ;;  %2349 = vmatpush.bf16.msra.mxu1 %v3734_v52  ;;  %v4040_v20 = vld [vmem:[#allocation2 + $0x30c] sm:$0xf0]  ;;  %v3526_v52 = vor.u32 %v4074_v59, %v3523_v18  ;;  %v3449_v59 = vld [vmem:[#allocation2 + $0x388] sm:$0xf]  ;;  %v4057_v18 = vld [vmem:[#allocation2 + $0x394] sm:$0xf0] }
 0x2c5   :  { %v3515_v5 = vld [vmem:[#allocation2 + $0x418] sm:$0xf0] }
 0x2c6   :  { %1811 = vmatpush.bf16.msrb.mxu2 %v3330_v17  ;;  %1824 = vmatpush.bf16.msrb.mxu3 %v3458_v0  ;;  %v4037_v17 = vld [vmem:[#allocation2 + $0x2f4] sm:$0xf0]  ;;  %v3497_v0 = vld [vmem:[#allocation2 + $0x3e8] sm:$0xf] }
 0x2c8   :  { %2337 = vmatpush.bf16.msra.mxu0 %v3590_v21  ;;  %2350 = vmatpush.bf16.msra.mxu1 %v3718_v22  ;;  %v3250_v21 = vor.u32 %v4008_v49, %v3249_v46  ;;  %v3378_v22 = vor.u32 %v4040_v20, %v3377_v50  ;;  %v4119_v46 = vld [vmem:[#allocation2 + $0x58c] sm:$0xf]  ;;  %v3450_v49 = vor.u32 %v4057_v18, %v3449_v59  ;;  %v3305_v50 = vld [vmem:[#allocation2 + $0x268] sm:$0xf]  ;;  %v4021_v20 = vld [vmem:[#allocation2 + $0x274] sm:$0xf0] }
 0x2c9   :  { %v3518_v59 = vor.u32 %v4071_v14, %v3515_v5  ;;  %v3609_v14 = vld [vmem:[#allocation2 + $0x4c8] sm:$0xf]  ;;  %v4097_v5 = vld [vmem:[#allocation2 + $0x4d4] sm:$0xf0] }
 0x2ca   :  { %1812 = vmatpush.bf16.msrb.mxu2 %v3314_v23  ;;  %1825 = vmatpush.bf16.msrb.mxu3 %v3442_v42  ;;  %v3370_v23 = vor.u32 %v4037_v17, %v3369_v16  ;;  %v3498_v42 = vor.u32 %v4069_v62, %v3497_v0  ;;  %v4115_v16 = vld [vmem:[#allocation2 + $0x56c] sm:$0xf]  ;;  %v3691_v17 = vld [vmem:[#allocation2 + $0x578] sm:$0xf0]  ;;  %v3306_v0 = vor.u32 %v4021_v20, %v3305_v50 }
 0x2cb   :  { %v3434_v62 = vor.u32 %v4053_v8, %v3433_v19  ;;  %v3713_v19 = vld [vmem:[#allocation2 + $0x5a0] sm:$0xf]  ;;  %v4124_v8 = vld [vmem:[#allocation2 + $0x5ac] sm:$0xf0] }
 0x2cc   :  { %2338 = vmatpush.bf16.msra.mxu0 %v3574_v58  ;;  %2351 = vmatpush.bf16.msra.mxu1 %v3702_v27  ;;  %v1984_v58 = vunpack.c.h.b16 %v4826_v6  ;;  %v3630_v27 = vor.u32 %v4099_v63, %v3627_v11  ;;  %v4029_v6 = vld [vmem:[#allocation2 + $0x2b4] sm:$0xf0]  ;;  %v3289_v63 = vld [vmem:[#allocation2 + $0x248] sm:$0xf]  ;;  %v3694_v11 = vor.u32 %v4115_v16, %v3691_v17  ;;  %v3569_v16 = vld [vmem:[#allocation2 + $0x480] sm:$0xf] }
 0x2cd   :  { %v4088_v17 = vld [vmem:[#allocation2 + $0x48c] sm:$0xf0] }
 0x2ce   :  { %1813 = vmatpush.bf16.msrb.mxu2 %v3298_v12  ;;  %1826 = vmatpush.bf16.msrb.mxu3 %v3426_v60  ;;  %v3739_v12 = vld [vmem:[#allocation2 + $0x5d8] sm:$0xf0]  ;;  %v4842_v60 = vpack.c.b16 %v1983_v41, %v1983_v41  ;;  %v4111_v41 = vld [vmem:[#allocation2 + $0x54c] sm:$0xf] }
 0x2cf   :  { %v3742_v45 = vor.u32 %v4127_v33, %v3739_v12  ;;  %v4107_v33 = vld [vmem:[#allocation2 + $0x52c] sm:$0xf]  ;;  %v3659_v12 = vld [vmem:[#allocation2 + $0x538] sm:$0xf0] }
 0x2d0   :  { %2339 = vmatpush.bf16.msra.mxu0 %v3558_v35  ;;  %2352 = vmatpush.bf16.msra.mxu1 %v3686_v38  ;;  %v3337_v35 = vld [vmem:[#allocation2 + $0x2a8] sm:$0xf]  ;;  %v4844_v38 = vpack.c.b16 %v1984_v58, %v1984_v58  ;;  %v4013_v58 = vld [vmem:[#allocation2 + $0x234] sm:$0xf0]  ;;  %v3662_v39 = vor.u32 %v4107_v33, %v3659_v12  ;;  %v3633_v33 = vld [vmem:[#allocation2 + $0x500] sm:$0xf] }
 0x2d1   :  { %v3338_v51 = vor.u32 %v4029_v6, %v3337_v35  ;;  %v3257_v35 = vld [vmem:[#allocation2 + $0x208] sm:$0xf]  ;;  %v4009_v6 = vld [vmem:[#allocation2 + $0x214] sm:$0xf0]  ;;  %v4104_v12 = vld [vmem:[#allocation2 + $0x50c] sm:$0xf0] }
 0x2d2   :  { %1814 = vmatpush.bf16.msrb.mxu2 %v3282_v4  ;;  %1827 = vmatpush.bf16.msrb.mxu3 %v3410_v40  ;;  %v4123_v4 = vld [vmem:[#allocation2 + $0x5ac] sm:$0xf]  ;;  %v3723_v40 = vld [vmem:[#allocation2 + $0x5b8] sm:$0xf0] }
 0x2d3   :  { %v3726_v44 = vor.u32 %v4123_v4, %v3723_v40  ;;  %v4103_v4 = vld [vmem:[#allocation2 + $0x50c] sm:$0xf]  ;;  %v3643_v40 = vld [vmem:[#allocation2 + $0x518] sm:$0xf0] }
 0x2d4   :  { %2340 = vmatpush.bf16.msra.mxu0 %v3542_v1  ;;  %2353 = vmatpush.bf16.msra.mxu1 %v3670_v10  ;;  %v3321_v1 = vld [vmem:[#allocation2 + $0x288] sm:$0xf]  ;;  %v4025_v10 = vld [vmem:[#allocation2 + $0x294] sm:$0xf0]  ;;  %v3646_v18 = vor.u32 %v4103_v4, %v3643_v40 }
 0x2d5   :  { %v3737_v4 = vld [vmem:[#allocation2 + $0x5c8] sm:$0xf]  ;;  %v4129_v40 = vld [vmem:[#allocation2 + $0x5d4] sm:$0xf0] }
 0x2d6   :  { %1815 = vmatpush.bf16.msrb.mxu2 %v3266_v47  ;;  %1828 = vmatpush.bf16.msrb.mxu3 %v3394_v48  ;;  %v3707_v47 = vld [vmem:[#allocation2 + $0x598] sm:$0xf0]  ;;  %v3322_v48 = vor.u32 %v4025_v10, %v3321_v1  ;;  %v3745_v1 = vld [vmem:[#allocation2 + $0x5e0] sm:$0xf]  ;;  %v4132_v10 = vld [vmem:[#allocation2 + $0x5ec] sm:$0xf0] }
 0x2d8   :  { %2341 = vmatpush.bf16.msra.mxu0 %v3526_v52  ;;  %2354 = vmatpush.bf16.msra.mxu1 %v3654_v57  ;;  %v3582_v52 = vor.u32 %v4087_v43, %v3579_v26  ;;  %v3710_v57 = vor.u32 %v4119_v46, %v3707_v47  ;;  %v3746_v26 = vor.u32 %v4132_v10, %v3745_v1  ;;  %v3601_v46 = vld [vmem:[#allocation2 + $0x4c0] sm:$0xf]  ;;  %v4096_v47 = vld [vmem:[#allocation2 + $0x4cc] sm:$0xf0]  ;;  %v3593_v1 = vld [vmem:[#allocation2 + $0x4a8] sm:$0xf] }
 0x2d9   :  { %v3602_v50 = vor.u32 %v4096_v47, %v3601_v46  ;;  %v4093_v10 = vld [vmem:[#allocation2 + $0x4b4] sm:$0xf0]  ;;  %v3705_v46 = vld [vmem:[#allocation2 + $0x588] sm:$0xf] }
 0x2da   :  { %1816 = vmatpush.bf16.msrb.mxu2 %v3250_v21  ;;  %1829 = vmatpush.bf16.msrb.mxu3 %v3378_v22  ;;  %v4017_v21 = vld [vmem:[#allocation2 + $0x254] sm:$0xf0]  ;;  %v3566_v22 = vor.u32 %v4083_v9, %v3563_v15  ;;  %v3714_v15 = vor.u32 %v4124_v8, %v3713_v19  ;;  %v3561_v19 = vld [vmem:[#allocation2 + $0x468] sm:$0xf] }
 0x2db   :  { %v4121_v47 = vld [vmem:[#allocation2 + $0x594] sm:$0xf0] }
 0x2dc   :  { %2342 = vmatpush.bf16.msra.mxu0 %v3510_v54  ;;  %2355 = vmatpush.bf16.msra.mxu1 %v3638_v55  ;;  %v4079_v54 = vld [vmem:[#allocation2 + $0x44c] sm:$0xf]  ;;  %v3547_v55 = vld [vmem:[#allocation2 + $0x458] sm:$0xf0]  ;;  %v4085_v8 = vld [vmem:[#allocation2 + $0x474] sm:$0xf0] }
 0x2dd   :  { %1817 = vmatmul.bf16.vlgmr.msrb.gmra.mxu2 %v4828_v2  ;;  %1830 = vmatmul.bf16.vlgmr.msrb.gmra.mxu3 %v4830_v7 }
 0x2de   :  { %1861 = vmatpush.bf16.msra.mxu2 %v3370_v23  ;;  %1874 = vmatpush.bf16.msra.mxu3 %v3498_v42  ;;  %v3675_v23 = vld [vmem:[#allocation2 + $0x558] sm:$0xf0]  ;;  %v3290_v42 = vor.u32 %v4017_v21, %v3289_v63  ;;  %v4084_v21 = vld [vmem:[#allocation2 + $0x46c] sm:$0xf0] }
 0x2df   :  { %2343 = vmatmul.bf16.vlgmr.msra.gmra.mxu0 %v4842_v60  ;;  %2356 = vmatmul.bf16.vlgmr.msra.gmra.mxu1 %v4844_v38 }
 0x2e0   :  { %2387 = vmatpush.bf16.msrb.mxu0 %v3630_v27  ;;  %2400 = vmatpush.bf16.msrb.mxu1 %v3758_v29  ;;  %v3550_v27 = vor.u32 %v4079_v54, %v3547_v55  ;;  %v3678_v29 = vor.u32 %v4111_v41, %v3675_v23  ;;  %v3537_v54 = vld [vmem:[#allocation2 + $0x440] sm:$0xf]  ;;  %v4080_v55 = vld [vmem:[#allocation2 + $0x44c] sm:$0xf0] }
 0x2e1   :  { %v3665_v41 = vld [vmem:[#allocation2 + $0x540] sm:$0xf]  ;;  %v4112_v23 = vld [vmem:[#allocation2 + $0x54c] sm:$0xf0] }
 0x2e2   :  { %1862 = vmatpush.bf16.msra.mxu2 %v3354_v61  ;;  %1875 = vmatpush.bf16.msra.mxu3 %v3482_v34  ;;  %v3274_v61 = vor.u32 %v4013_v58, %v3273_v30  ;;  %v3402_v34 = vor.u32 %v4045_v32, %v3401_v31  ;;  %v3521_v30 = vld [vmem:[#allocation2 + $0x420] sm:$0xf]  ;;  %v4076_v58 = vld [vmem:[#allocation2 + $0x42c] sm:$0xf0] }
 0x2e3   :  { %v3522_v31 = vor.u32 %v4076_v58, %v3521_v30  ;;  %v4109_v30 = vld [vmem:[#allocation2 + $0x534] sm:$0xf0] }
 0x2e4   :  { %2388 = vmatpush.bf16.msrb.mxu0 %v3614_v37  ;;  %2401 = vmatpush.bf16.msrb.mxu1 %v3742_v45  ;;  %v3385_v37 = vld [vmem:[#allocation2 + $0x308] sm:$0xf]  ;;  %v3534_v45 = vor.u32 %v4075_v25, %v3531_v56  ;;  %v3505_v25 = vld [vmem:[#allocation2 + $0x400] sm:$0xf]  ;;  %v4072_v56 = vld [vmem:[#allocation2 + $0x40c] sm:$0xf0] }
 0x2e6   :  { %1863 = vmatpush.bf16.msra.mxu2 %v3338_v51  ;;  %1876 = vmatpush.bf16.msra.mxu3 %v3466_v28  ;;  %v3617_v51 = vld [vmem:[#allocation2 + $0x4e0] sm:$0xf]  ;;  %v4100_v28 = vld [vmem:[#allocation2 + $0x4ec] sm:$0xf0] }
 0x2e7   :  { %v3618_v43 = vor.u32 %v4100_v28, %v3617_v51  ;;  %v3610_v51 = vor.u32 %v4097_v5, %v3609_v14  ;;  %v3738_v28 = vor.u32 %v4129_v40, %v3737_v4  ;;  %v4147_v5 = vld [vmem:[%s4989_s5 + $0x68] sm:$0xff] }
 0x2e8   :  { %2389 = vmatpush.bf16.msrb.mxu0 %v3598_v36  ;;  %2402 = vmatpush.bf16.msrb.mxu1 %v3726_v44  ;;  %v3258_v36 = vor.u32 %v4009_v6, %v3257_v35  ;;  %v3386_v44 = vor.u32 %v4041_v3, %v3385_v37  ;;  %v3753_v35 = vld [vmem:[#allocation2 + $0x5e8] sm:$0xf]  ;;  %v4133_v6 = vld [vmem:[#allocation2 + $0x5f4] sm:$0xf0]  ;;  %v3506_v37 = vor.u32 %v4072_v56, %v3505_v25 }
 0x2e9   :  { %v3754_v3 = vor.u32 %v4133_v6, %v3753_v35  ;;  %v4073_v25 = vld [vmem:[#allocation2 + $0x414] sm:$0xf0]  ;;  %v3641_v56 = vld [vmem:[#allocation2 + $0x508] sm:$0xf] }
 0x2ea   :  { %1864 = vmatpush.bf16.msra.mxu2 %v3322_v48  ;;  %1877 = vmatpush.bf16.msra.mxu3 %v3450_v49  ;;  %v3729_v48 = vld [vmem:[#allocation2 + $0x5c0] sm:$0xf]  ;;  %v4128_v49 = vld [vmem:[#allocation2 + $0x5cc] sm:$0xf0]  ;;  %v4149_v6 = vld [vmem:[%s4989_s5 + $0x78] sm:$0xff] }
 0x2eb   :  { %v3730_v20 = vor.u32 %v4128_v49, %v3729_v48 }
 0x2ec   :  { %2390 = vmatpush.bf16.msrb.mxu0 %v3582_v52  ;;  %2403 = vmatpush.bf16.msrb.mxu1 %v3710_v57  ;;  %v3585_v52 = vld [vmem:[#allocation2 + $0x4a0] sm:$0xf]  ;;  %v4092_v57 = vld [vmem:[#allocation2 + $0x4ac] sm:$0xf0] }
 0x2ed   :  { %v3586_v9 = vor.u32 %v4092_v57, %v3585_v52  ;;  %v3706_v57 = vor.u32 %v4121_v47, %v3705_v46 }
 0x2ee   :  { %1865 = vmatpush.bf16.msra.mxu2 %v3306_v0  ;;  %1878 = vmatpush.bf16.msra.mxu3 %v3434_v62  ;;  %v3697_v0 = vld [vmem:[#allocation2 + $0x580] sm:$0xf]  ;;  %v4120_v62 = vld [vmem:[#allocation2 + $0x58c] sm:$0xf0] }
 0x2ef   :  { %v3698_v63 = vor.u32 %v4120_v62, %v3697_v0 }
 0x2f0   :  { %2391 = vmatpush.bf16.msrb.mxu0 %v3566_v22  ;;  %2404 = vmatpush.bf16.msrb.mxu1 %v3694_v11  ;;  %v3681_v22 = vld [vmem:[#allocation2 + $0x560] sm:$0xf]  ;;  %v4116_v11 = vld [vmem:[#allocation2 + $0x56c] sm:$0xf0] }
 0x2f1   :  { %v3682_v13 = vor.u32 %v4116_v11, %v3681_v22  ;;  %v3673_v22 = vld [vmem:[#allocation2 + $0x548] sm:$0xf]  ;;  %v4113_v11 = vld [vmem:[#allocation2 + $0x554] sm:$0xf0] }
 0x2f2   :  { %1866 = vmatpush.bf16.msra.mxu2 %v3290_v42  ;;  %1879 = vmatpush.bf16.msra.mxu3 %v3418_v24  ;;  %v3538_v42 = vor.u32 %v4080_v55, %v3537_v54  ;;  %v3666_v24 = vor.u32 %v4112_v23, %v3665_v41  ;;  %v3674_v41 = vor.u32 %v4113_v11, %v3673_v22  ;;  %v3529_v23 = vld [vmem:[#allocation2 + $0x428] sm:$0xf]  ;;  %v4158_v11 = vld [vmem:[%s4989_s5 + $0xc0] sm:$0xff] }
 0x2f4   :  { %2392 = vmatpush.bf16.msrb.mxu0 %v3550_v27  ;;  %2405 = vmatpush.bf16.msrb.mxu1 %v3678_v29  ;;  %v3649_v27 = vld [vmem:[#allocation2 + $0x520] sm:$0xf]  ;;  %v4108_v29 = vld [vmem:[#allocation2 + $0x52c] sm:$0xf0] }
 0x2f5   :  { %v3650_v32 = vor.u32 %v4108_v29, %v3649_v27 }
 0x2f6   :  { %1867 = vmatpush.bf16.msra.mxu2 %v3274_v61  ;;  %1880 = vmatpush.bf16.msra.mxu3 %v3402_v34  ;;  %v3625_v61 = vld [vmem:[#allocation2 + $0x4e8] sm:$0xf]  ;;  %v4101_v34 = vld [vmem:[#allocation2 + $0x4f4] sm:$0xf0] }
 0x2f8   :  { %2393 = vmatpush.bf16.msrb.mxu0 %v3534_v45  ;;  %2406 = vmatpush.bf16.msrb.mxu1 %v3662_v39  ;;  %v3634_v45 = vor.u32 %v4104_v12, %v3633_v33  ;;  %v3626_v39 = vor.u32 %v4101_v34, %v3625_v61  ;;  %v4105_v33 = vld [vmem:[#allocation2 + $0x514] sm:$0xf0] }
 0x2f9   :  { %v3642_v35 = vor.u32 %v4105_v33, %v3641_v56  ;;  %v4136_v33 = vld [vmem:[%s4989_s5 + $0x10] sm:$0xff] }
 0x2fa   :  { %1868 = vmatpush.bf16.msra.mxu2 %v3258_v36  ;;  %1881 = vmatpush.bf16.msra.mxu3 %v3386_v44  ;;  %v3721_v36 = vld [vmem:[#allocation2 + $0x5a8] sm:$0xf]  ;;  %v4125_v44 = vld [vmem:[#allocation2 + $0x5b4] sm:$0xf0] }
 0x2fc   :  { %2394 = vmatpush.bf16.msrb.mxu0 %v3518_v59  ;;  %2407 = vmatpush.bf16.msrb.mxu1 %v3646_v18  ;;  %v3594_v59 = vor.u32 %v4093_v10, %v3593_v1  ;;  %v3722_v18 = vor.u32 %v4125_v44, %v3721_v36 }
 0x2fd   :  { %1869 = vmatmul.bf16.vlgmr.msra.gmra.mxu2 %v4828_v2  ;;  %1882 = vmatmul.bf16.vlgmr.msra.gmra.mxu3 %v4830_v7  ;;  %v3570_v2 = vor.u32 %v4088_v17, %v3569_v16  ;;  %v3553_v7 = vld [vmem:[#allocation2 + $0x460] sm:$0xf] }
 0x2fe   :  { %2309 = vmatpush.bf16.msrb.mxu2 %v3618_v43  ;;  %2322 = vmatpush.bf16.msrb.mxu3 %v3746_v26  ;;  %v3554_v53 = vor.u32 %v4084_v21, %v3553_v7  ;;  %v3577_v43 = vld [vmem:[#allocation2 + $0x488] sm:$0xf]  ;;  %v4089_v26 = vld [vmem:[#allocation2 + $0x494] sm:$0xf0] }
 0x2ff   :  { %2395 = vmatmul.bf16.vlgmr.msrb.gmra.mxu0 %v4842_v60  ;;  %2408 = vmatmul.bf16.vlgmr.msrb.gmra.mxu1 %v4844_v38  ;;  %v3578_v52 = vor.u32 %v4089_v26, %v3577_v43  ;;  %v3545_v7 = vld [vmem:[#allocation2 + $0x448] sm:$0xf]  ;;  %v4081_v21 = vld [vmem:[#allocation2 + $0x454] sm:$0xf0]  ;;  %v4164_v43 = vld [vmem:[%s4989_s5 + $0xf0] sm:$0xff] }
 0x300   :  { %v3546_v55 = vor.u32 %v4081_v21, %v3545_v7 }
 0x302   :  { %2310 = vmatpush.bf16.msrb.mxu2 %v3602_v50  ;;  %2323 = vmatpush.bf16.msrb.mxu3 %v3730_v20  ;;  %v4859_v50 = vld [vmem:[%s4992_s8] sm:$0xf] }
 0x303   :  { %v1405_v16 = vperm.slane %v4859_v50, 0  ;;  %v1407_v10 = vperm.slane %v4859_v50, 2  ;;  %v1408_v56 = vperm.slane %v4859_v50, 3 }
 0x306   :  { %2311 = vmatpush.bf16.msrb.mxu2 %v3586_v9  ;;  %2324 = vmatpush.bf16.msrb.mxu3 %v3714_v15  ;;  %v3689_v9 = vld [vmem:[#allocation2 + $0x568] sm:$0xf]  ;;  %v4117_v15 = vld [vmem:[#allocation2 + $0x574] sm:$0xf0] }
 0x30a   :  { %2312 = vmatpush.bf16.msrb.mxu2 %v3570_v2  ;;  %2325 = vmatpush.bf16.msrb.mxu3 %v3698_v63  ;;  %v3562_v2 = vor.u32 %v4085_v8, %v3561_v19  ;;  %v3690_v63 = vor.u32 %v4117_v15, %v3689_v9  ;;  %v4162_v19 = vld [vmem:[%s4989_s5 + $0xe0] sm:$0xff]  ;;  %v4161_v9 = vld [vmem:[%s4989_s5 + $0xd8] sm:$0xff]  ;;  %v4160_v15 = vld [vmem:[%s4989_s5 + $0xd0] sm:$0xff] }
 0x30b   :  { %v4142_v8 = vld [vmem:[%s4989_s5 + $0x40] sm:$0xff] }
 0x30e   :  { %2313 = vmatpush.bf16.msrb.mxu2 %v3554_v53  ;;  %2326 = vmatpush.bf16.msrb.mxu3 %v3682_v13 }
 0x312   :  { %2314 = vmatpush.bf16.msrb.mxu2 %v3538_v42  ;;  %2327 = vmatpush.bf16.msrb.mxu3 %v3666_v24  ;;  %v4077_v42 = vld [vmem:[#allocation2 + $0x434] sm:$0xf0]  ;;  %v3657_v24 = vld [vmem:[#allocation2 + $0x528] sm:$0xf] }
 0x313   :  { %v3530_v29 = vor.u32 %v4077_v42, %v3529_v23  ;;  %v4141_v23 = vld [vmem:[%s4989_s5 + $0x38] sm:$0xff] }
 0x316   :  { %2315 = vmatpush.bf16.msrb.mxu2 %v3522_v31  ;;  %2328 = vmatpush.bf16.msrb.mxu3 %v3650_v32  ;;  %v3658_v31 = vor.u32 %v4109_v30, %v3657_v24  ;;  %v3513_v32 = vld [vmem:[#allocation2 + $0x408] sm:$0xf] }
 0x317   :  { %v3514_v34 = vor.u32 %v4073_v25, %v3513_v32  ;;  %v4138_v32 = vld [vmem:[%s4989_s5 + $0x20] sm:$0xff]  ;;  %v4137_v25 = vld [vmem:[%s4989_s5 + $0x18] sm:$0xff] }
 0x31a   :  { %2316 = vmatpush.bf16.msrb.mxu2 %v3506_v37  ;;  %2329 = vmatpush.bf16.msrb.mxu3 %v3634_v45 }
 0x31c   :  { %v1387_v48 = vpop.f32.mrf.mxu0  ;;  %v1400_v49 = vpop.f32.mrf.mxu1 }
 0x31d   :  { %2317 = vmatmul.bf16.vlgmr.msrb.gmra.mxu2 %v4842_v60  ;;  %2330 = vmatmul.bf16.vlgmr.msrb.gmra.mxu3 %v4844_v38  ;;  %v4861_v20 = vadd.f32 %v1400_v49, %v1387_v48  ;;  %v4143_v48 = vld [vmem:[%s4989_s5 + $0x48] sm:$0xff] }
 0x31e   :  { %2361 = vmatpush.bf16.msra.mxu2 %v3626_v39  ;;  %2374 = vmatpush.bf16.msra.mxu3 %v3754_v3  ;;  %v4148_v39 = vld [vmem:[%s4989_s5 + $0x70] sm:$0xff]  ;;  %v4163_v49 = vld [vmem:[%s4989_s5 + $0xe8] sm:$0xff] }
 0x320   :  { %v1309_v17 = vpop.f32.mrf.mxu2  ;;  %v1322_v0 = vpop.f32.mrf.mxu3 }
 0x321   :  { %v1323_v62 = vadd.f32 %v1322_v0, %v1309_v17  ;;  %v1406_v17 = vperm.slane %v4859_v50, 1  ;;  %v4135_v50 = vld [vmem:[%s4989_s5 + $0x8] sm:$0xff] }
 0x322   :  { %2362 = vmatpush.bf16.msra.mxu2 %v3610_v51  ;;  %2375 = vmatpush.bf16.msra.mxu3 %v3738_v28  ;;  %v4146_v51 = vld [vmem:[%s4989_s5 + $0x60] sm:$0xff] }
 0x323   :  { %v4864_v53 = vadd.f32 %v1405_v16, %v1323_v62  ;;  %v4159_v62 = vld [vmem:[%s4989_s5 + $0xc8] sm:$0xff] }
 0x324   :  { %v1389_v13 = vpop.f32.mrf.mxu0  ;;  %v1402_v54 = vpop.f32.mrf.mxu1 }
 0x326   :  { %2363 = vmatpush.bf16.msra.mxu2 %v3594_v59  ;;  %2376 = vmatpush.bf16.msra.mxu3 %v3722_v18  ;;  %v4144_v18 = vld [vmem:[%s4989_s5 + $0x50] sm:$0xff] }
 0x328   :  { %v1311_v58 = vpop.f32.mrf.mxu2  ;;  %v1324_v27 = vpop.f32.mrf.mxu3 }
 0x329   :  { %v4140_v58 = vld [vmem:[%s4989_s5 + $0x30] sm:$0xff]  ;;  %v4139_v27 = vld [vmem:[%s4989_s5 + $0x28] sm:$0xff] }
 0x32a   :  { %2364 = vmatpush.bf16.msra.mxu2 %v3578_v52  ;;  %2377 = vmatpush.bf16.msra.mxu3 %v3706_v57 }
 0x32c   :  { %v1844_v12 = vpop.f32.mrf.mxu0  ;;  %v1857_v61 = vpop.f32.mrf.mxu1 }
 0x32e   :  { %2365 = vmatpush.bf16.msra.mxu2 %v3562_v2  ;;  %2378 = vmatpush.bf16.msra.mxu3 %v3690_v63  ;;  %v1858_v2 = vadd.f32 %v1857_v61, %v1844_v12  ;;  %v1416_v61 = vadd.f32 %v1408_v56, %v4861_v20 }
 0x330   :  { %v1335_v37 = vpop.f32.mrf.mxu2  ;;  %v1348_v45 = vpop.f32.mrf.mxu3 }
 0x331   :  { %v1349_v16 = vadd.f32 %v1348_v45, %v1335_v37 }
 0x332   :  { %2366 = vmatpush.bf16.msra.mxu2 %v3546_v55  ;;  %2379 = vmatpush.bf16.msra.mxu3 %v3674_v41 }
 0x333   :  { %v1414_v0 = vadd.f32 %v1406_v17, %v1349_v16 }
 0x334   :  { %v1846_v3 = vpop.f32.mrf.mxu0  ;;  %v1859_v14 = vpop.f32.mrf.mxu1 }
 0x335   :  { %v1914_v21 = vadd.f32 %v1858_v2, %v1414_v0 }
 0x336   :  { %2367 = vmatpush.bf16.msra.mxu2 %v3530_v29  ;;  %2380 = vmatpush.bf16.msra.mxu3 %v3658_v31 }
 0x338   :  { %v1337_v4 = vpop.f32.mrf.mxu2  ;;  %v1350_v40 = vpop.f32.mrf.mxu3 }
 0x339   :  { %v4134_v4 = vld [vmem:[%s4989_s5] sm:$0xff] }
 0x33a   :  { %2368 = vmatpush.bf16.msra.mxu2 %v3514_v34  ;;  %2381 = vmatpush.bf16.msra.mxu3 %v3642_v35 }
 0x33c   :  { %v4880_v28 = vpop.f32.mrf.mxu0  ;;  %v4882_v1 = vpop.f32.mrf.mxu1 }
 0x33d   :  { %2369 = vmatmul.bf16.vlgmr.msra.gmra.mxu2 %v4842_v60  ;;  %2382 = vmatmul.bf16.vlgmr.msra.gmra.mxu3 %v4844_v38  ;;  %v4145_v60 = vld [vmem:[%s4989_s5 + $0x58] sm:$0xff]  ;;  %v1910_v12 = vadd.f32 %v4882_v1, %v4880_v28  ;;  %v4156_v28 = vld [vmem:[%s4989_s5 + $0xb0] sm:$0xff] }
 0x33e   :  { %2698 = vmatpush.bf16.msrb.mxu3 %v4149_v6  ;;  %v4165_v38 = vld [vmem:[%s4989_s5 + $0xf8] sm:$0xff]  ;;  %2685 = vmatpush.bf16.msrb.mxu2 %v4141_v23  ;;  %v4169_v23 = vld [vmem:[%s4993_s9] ss:$0 sm:$0xff] }
 0x33f   :  { %2724 = vmatpush.bf16.msra.mxu1 %v4165_v38  ;;  %v1916_v6 = vadd.f32 %v1910_v12, %v1416_v61  ;;  %v4155_v38 = vld [vmem:[%s4989_s5 + $0xa8] sm:$0xff] }
 0x340   :  { %v1361_v36 = vpop.f32.mrf.mxu2  ;;  %v1374_v44 = vpop.f32.mrf.mxu3 }
 0x341   :  { %v1375_v59 = vadd.f32 %v1374_v44, %v1361_v36  ;;  %v4153_v36 = vld [vmem:[%s4989_s5 + $0x98] sm:$0xff]  ;;  %v4152_v44 = vld [vmem:[%s4989_s5 + $0x90] sm:$0xff] }
 0x342   :  { %2699 = vmatpush.bf16.msrb.mxu3 %v4148_v39  ;;  %2686 = vmatpush.bf16.msrb.mxu2 %v4140_v58 }
 0x343   :  { %v4897_v26 = vadd.f32 %v1407_v10, %v1375_v59  ;;  %2725 = vmatpush.bf16.msra.mxu1 %v4164_v43  ;;  %v4154_v10 = vld [vmem:[%s4989_s5 + $0xa0] sm:$0xff] }
 0x344   :  { %v1898_v46 = vpop.f32.mrf.mxu0  ;;  %v1911_v47 = vpop.f32.mrf.mxu1 }
 0x346   :  { %2700 = vmatpush.bf16.msrb.mxu3 %v4147_v5  ;;  %2687 = vmatpush.bf16.msrb.mxu2 %v4139_v27 }
 0x347   :  { %2726 = vmatpush.bf16.msra.mxu1 %v4163_v49  ;;  %v4150_v49 = vld [vmem:[%s4989_s5 + $0x80] sm:$0xff] }
 0x348   :  { %v1363_v52 = vpop.f32.mrf.mxu2  ;;  %v1376_v57 = vpop.f32.mrf.mxu3 }
 0x34a   :  { %2701 = vmatpush.bf16.msrb.mxu3 %v4146_v51  ;;  %2688 = vmatpush.bf16.msrb.mxu2 %v4138_v32  ;;  %v4157_v51 = vld [vmem:[%s4989_s5 + $0xb8] sm:$0xff] }
 0x34b   :  { %2727 = vmatpush.bf16.msra.mxu1 %v4162_v19  ;;  %2711 = vmatpush.bf16.msra.mxu0 %v4157_v51 }
 0x34e   :  { %2702 = vmatpush.bf16.msrb.mxu3 %v4145_v60  ;;  %2689 = vmatpush.bf16.msrb.mxu2 %v4137_v25 }
 0x34f   :  { %2728 = vmatpush.bf16.msra.mxu1 %v4161_v9  ;;  %2712 = vmatpush.bf16.msra.mxu0 %v4156_v28 }
 0x352   :  { %2703 = vmatpush.bf16.msrb.mxu3 %v4144_v18  ;;  %2690 = vmatpush.bf16.msrb.mxu2 %v4136_v33  ;;  %v4151_v18 = vld [vmem:[%s4989_s5 + $0x88] sm:$0xff] }
 0x353   :  { %2729 = vmatpush.bf16.msra.mxu1 %v4160_v15  ;;  %2713 = vmatpush.bf16.msra.mxu0 %v4155_v38 }
 0x356   :  { %2704 = vmatpush.bf16.msrb.mxu3 %v4143_v48  ;;  %2691 = vmatpush.bf16.msrb.mxu2 %v4135_v50 }
 0x357   :  { %2730 = vmatpush.bf16.msra.mxu1 %v4159_v62  ;;  %2714 = vmatpush.bf16.msra.mxu0 %v4154_v10 }
 0x35a   :  { %2705 = vmatpush.bf16.msrb.mxu3 %v4142_v8  ;;  %2692 = vmatpush.bf16.msrb.mxu2 %v4134_v4 }
 0x35b   :  { %2731 = vmatpush.bf16.msra.mxu1 %v4158_v11  ;;  %2715 = vmatpush.bf16.msra.mxu0 %v4153_v36 }
 0x35c   :  { %v2344_v63 = vpop.f32.mrf.mxu0  ;;  %v2357_v7 = vpop.f32.mrf.mxu1 }
 0x35d   :  { %v2358_v22 = vadd.f32 %v2357_v7, %v2344_v63 }
 0x35f   :  { %v2414_v13 = vadd.f32 %v2358_v22, %v1914_v21  ;;  %2716 = vmatpush.bf16.msra.mxu0 %v4152_v44 }
 0x360   :  { %v1818_v55 = vpop.f32.mrf.mxu2  ;;  %v1831_v41 = vpop.f32.mrf.mxu3 }
 0x361   :  { %v2418_v54 = vmax.f32 %v2414_v13, 0.0  ;;  %v1832_v59 = vadd.f32 %v1831_v41, %v1818_v55 }
 0x363   :  { %v2422_v42 = vpack.c.bf16 %v2418_v54, %v2418_v54  ;;  %2717 = vmatpush.bf16.msra.mxu0 %v4151_v18  ;;  %v1913_v47 = vadd.f32 %v1832_v59, %v4864_v53 }
 0x364   :  { %v2346_v24 = vpop.f32.mrf.mxu0  ;;  %v2359_v30 = vpop.f32.mrf.mxu1 }
 0x365   :  { %2706 = vmatmul.bf16.vlgmr.msrb.gmra.mxu3 %v2422_v42 }
 0x367   :  { %2718 = vmatpush.bf16.msra.mxu0 %v4150_v49 }
 0x368   :  { %v1820_v29 = vpop.f32.mrf.mxu2  ;;  %v1833_v31 = vpop.f32.mrf.mxu3 }
 0x37c   :  { %v2396_v34 = vpop.f32.mrf.mxu0  ;;  %v2409_v35 = vpop.f32.mrf.mxu1 }
 0x37d   :  { %v2410_v37 = vadd.f32 %v2409_v35, %v2396_v34 }
 0x37f   :  { %v2416_v45 = vadd.f32 %v2410_v37, %v1916_v6 }
 0x380   :  { %v1870_v3 = vpop.f32.mrf.mxu2  ;;  %v1883_v14 = vpop.f32.mrf.mxu3 }
 0x381   :  { %v2420_v39 = vmax.f32 %v2416_v45, 0.0  ;;  %v1884_v15 = vadd.f32 %v1883_v14, %v1870_v3 }
 0x383   :  { %v2424_v5 = vpack.c.bf16 %v2420_v39, %v2420_v39  ;;  %v1915_v0 = vadd.f32 %v1884_v15, %v4897_v26 }
 0x384   :  { %v2398_v20 = vpop.f32.mrf.mxu0  ;;  %v2411_v40 = vpop.f32.mrf.mxu1 }
 0x385   :  { %2732 = vmatmul.bf16.vlgmr.msra.gmra.mxu1 %v2424_v5 }
 0x388   :  { %v1872_v1 = vpop.f32.mrf.mxu2  ;;  %v1885_v60 = vpop.f32.mrf.mxu3 }
 0x3a0   :  { %v2318_v43 = vpop.f32.mrf.mxu2  ;;  %v2331_v46 = vpop.f32.mrf.mxu3 }
 0x3a1   :  { %v2332_v48 = vadd.f32 %v2331_v46, %v2318_v43 }
 0x3a3   :  { %v2413_v52 = vadd.f32 %v2332_v48, %v1913_v47 }
 0x3a5   :  { %v2417_v57 = vmax.f32 %v2413_v52, 0.0 }
 0x3a7   :  { %v2421_v19 = vpack.c.bf16 %v2417_v57, %v2417_v57 }
 0x3a8   :  { %v2320_v8 = vpop.f32.mrf.mxu2  ;;  %v2333_v9 = vpop.f32.mrf.mxu3 }
 0x3a9   :  { %2693 = vmatmul.bf16.vlgmr.msrb.gmra.mxu2 %v2421_v19 }
 0x3c0   :  { %v2370_v16 = vpop.f32.mrf.mxu2  ;;  %v2383_v17 = vpop.f32.mrf.mxu3 }
 0x3c1   :  { %v2384_v62 = vadd.f32 %v2383_v17, %v2370_v16 }
 0x3c3   :  { %v2415_v2 = vadd.f32 %v2384_v62, %v1915_v0 }
 0x3c5   :  { %v2419_v53 = vmax.f32 %v2415_v2, 0.0 }
 0x3c7   :  { %v2423_v63 = vpack.c.bf16 %v2419_v53, %v2419_v53 }
 0x3c8   :  { %v2372_v7 = vpop.f32.mrf.mxu2  ;;  %v2385_v21 = vpop.f32.mrf.mxu3 }
 0x3c9   :  { %2719 = vmatmul.bf16.vlgmr.msra.gmra.mxu0 %v2423_v63 }
 0x3e8   :  { %v2707_v22 = vpop.f32.mrf.mxu3 }
 0x3f0   :  { %v2709_v11 = vpop.f32.mrf.mxu3 }
 0x402   :  { %v2733_v13 = vpop.f32.mrf.mxu1 }
 0x40a   :  { %v2735_v54 = vpop.f32.mrf.mxu1 }
 0x42c   :  { %v2694_v55 = vpop.f32.mrf.mxu2 }
 0x42d   :  { %v2695_v42 = vadd.f32 %v4169_v23, %v2694_v55 }
 0x42f   :  { %v2708_v24 = vadd.f32 %v2707_v22, %v2695_v42 }
 0x434   :  { %v2696_v41 = vpop.f32.mrf.mxu2 }
 0x446   :  { %v2720_v26 = vpop.f32.mrf.mxu0 }
 0x447   :  { %v2721_v30 = vadd.f32 %v2720_v26, %v2708_v24 }
 0x449   :  { %v2734_v58 = vadd.f32 %v2733_v13, %v2721_v30 }
 0x44b   :  { %2737 = vst [vmem:[%s4994_s10] sm:$0xff] %v2734_v58 }
 0x44e   :  { %v2722_v27 = vpop.f32.mrf.mxu0 }
 0x44f   :  { %2742 = vsyncpa [#allocation3], 1 }

</bundles_post_ra>
